<compile_context>
chip_gen: v6e
topology: v6e:2x2x1
jax: 0.10.0
libtpu: 0.0.40
codegen_flags: <defaults>
</compile_context>

<pallas_src>
import functools
import math

import jax
import jax.numpy as jnp
from jax.experimental import pallas as pl
from jax.experimental.pallas import tpu as pltpu

# ----------------------- config -----------------------
VOCAB = 181          # vocab_size from the module
VOCAB_PAD = 256      # padded vocab rows for the one-hot matmul
MAX_POS = 64         # scaled-down max_position_embeddings
POS_PAD = 128        # padded position rows
HEADS = 4            # scaled-down num_attention_heads
LAYERS = 2           # scaled-down num_hidden_layers
HIDDEN = 32          # scaled-down feature_dim / hidden_size
INTER = 4 * HIDDEN   # RobertaConfig default intermediate_size = 4*hidden
HEAD_DIM = HIDDEN // HEADS
PAD_ID = 1           # RoBERTa pad_token_id / padding_idx
LN_EPS = 1e-12       # RobertaConfig default layer_norm_eps
HP = 128             # hidden axis padded to a full 128-lane vreg

# Number of grid steps the batch is split into. 1 = whole batch in one step
# (best on single-TensorCore v5e/v6e). On v7x set to 2 so each TC gets half.
NUM_GROUPS = 1


# ----------------------- fused Pallas kernel -----------------------
def _fused_kernel(tok_ref, bias_ref, wtab_ref, ptab_ref,
                  wqkv_ref, wo_ref, wi_ref, wf_ref, dw_ref,
                  lsm_ref, gsm_ref, out_ref, *, seq_len):
    f32 = jnp.float32
    bf16 = jnp.bfloat16
    M = tok_ref.shape[1]                      # folded rows = (B/G) * S
    n_seq = M // seq_len
    inv_h = 1.0 / HIDDEN
    scale = 1.0 / math.sqrt(HEAD_DIM)

    def layernorm(x, g, b):
        # Padded lanes of x are provably zero at every call site, so plain sums
        # over all 128 lanes are exact; var = E[x^2] - mu^2 avoids a lane mask.
        mu = jnp.sum(x, axis=-1, keepdims=True) * inv_h
        var = jnp.sum(x * x, axis=-1, keepdims=True) * inv_h - mu * mu
        return (x - mu) * jax.lax.rsqrt(var + LN_EPS) * g + b

    # ---- embeddings via one-hot matmuls (no gathers, tables stay in VMEM) ----
    tok = tok_ref[0]                          # (M, 2) int32: [word_id, pos_id]
    word_id = tok[:, 0:1]
    pos_id = tok[:, 1:2]
    v_iota = jax.lax.broadcasted_iota(jnp.int32, (1, VOCAB_PAD), 1)
    p_iota = jax.lax.broadcasted_iota(jnp.int32, (1, POS_PAD), 1)
    w_onehot = jnp.where(word_id == v_iota, 1.0, 0.0).astype(bf16)   # (M, 256)
    p_onehot = jnp.where(pos_id == p_iota, 1.0, 0.0).astype(bf16)    # (M, 128)

    emb = (jnp.dot(w_onehot, wtab_ref[...], preferred_element_type=f32)
           + jnp.dot(p_onehot, ptab_ref[...], preferred_element_type=f32)
           + gsm_ref[2:3, :])                 # token_type_ids == 0 row
    h = layernorm(emb, gsm_ref[0:1, :], gsm_ref[1:2, :])             # (M, HP)

    bias = bias_ref[0]                        # (M, M) block-diag + key mask
    zero_pad = jnp.zeros((M, HP - HIDDEN), f32)   # hoisted out of layer loop

    for l in range(LAYERS):
        sm = lsm_ref[l]                       # (8, HP): biases + LN params

        # Fused, lane-padded QKV projection: (M,128) @ (128,128) bf16 on MXU.
        qkv = jnp.dot(h.astype(bf16), wqkv_ref[l],
                      preferred_element_type=f32) + sm[0:1, :]

        ctxs = []
        for hd in range(HEADS):
            lo = hd * HEAD_DIM
            q = qkv[:, lo:lo + HEAD_DIM].astype(bf16)
            k = qkv[:, HIDDEN + lo:HIDDEN + lo + HEAD_DIM].astype(bf16)
            v = qkv[:, 2 * HIDDEN + lo:2 * HIDDEN + lo + HEAD_DIM].astype(bf16)

            # q @ k^T, bf16 operands, f32 accumulate.
            s = jax.lax.dot_general(q, k, (((1,), (1,)), ((), ())),
                                    preferred_element_type=f32)
            s = s * scale + bias
            s = s - jnp.max(s, axis=-1, keepdims=True)
            p = jnp.exp(s)
            p = p * pl.reciprocal(jnp.sum(p, axis=-1, keepdims=True),
                                  approx=False)
            ctxs.append(jnp.dot(p.astype(bf16), v,
                                preferred_element_type=f32))          # (M, dh)

        # Fused output projection: one (M,128)@(128,128) bf16 dot for all heads.
        ctx_all = jnp.concatenate(ctxs + [zero_pad], axis=-1)         # (M, HP)
        attn = jnp.dot(ctx_all.astype(bf16), wo_ref[l],
                       preferred_element_type=f32) + sm[1:2, :]
        h1 = layernorm(attn + h, sm[2:3, :], sm[3:4, :])

        # FFN: (M,128)@(128,128) -> exact erf GELU -> (M,128)@(128,128).
        inter = jnp.dot(h1.astype(bf16), wi_ref[l],
                        preferred_element_type=f32) + sm[4:5, :]
        inter = 0.5 * inter * (1.0 + jax.lax.erf(inter * (1.0 / math.sqrt(2.0))))
        ffn = jnp.dot(inter.astype(bf16), wf_ref[l],
                      preferred_element_type=f32) + sm[5:6, :]
        h = layernorm(ffn + h1, sm[6:7, :], sm[7:8, :])

    # CLS rows (one per sequence in this group) -> dense -> L2 normalize.
    cls = jnp.concatenate([h[i * seq_len:i * seq_len + 1, :]
                           for i in range(n_seq)], axis=0)            # (Bg, HP)
    feat = jnp.dot(cls.astype(bf16), dw_ref[...],
                   preferred_element_type=f32) + gsm_ref[3:4, :]
    ss = jnp.sum(feat * feat, axis=-1, keepdims=True)
    out_ref[0] = feat * jax.lax.rsqrt(jnp.maximum(ss, 1e-24))


# ----------------------- parameter packing (pad to 128 lanes) -----------------------
def _pad2(w, rows=HP, cols=HP):
    out = jnp.zeros((rows, cols), jnp.float32)
    return out.at[:w.shape[0], :w.shape[1]].set(w)


def _pack_params(p):
    bf16 = jnp.bfloat16

    wtab = jnp.zeros((VOCAB_PAD, HP), jnp.float32)
    wtab = wtab.at[:VOCAB, :HIDDEN].set(p["word_emb"]).astype(bf16)
    ptab = jnp.zeros((POS_PAD, HP), jnp.float32)
    ptab = ptab.at[:MAX_POS, :HIDDEN].set(p["pos_emb"]).astype(bf16)

    gsm = jnp.zeros((8, HP), jnp.float32)
    gsm = gsm.at[0, :HIDDEN].set(p["emb_ln_g"])
    gsm = gsm.at[1, :HIDDEN].set(p["emb_ln_b"])
    gsm = gsm.at[2, :HIDDEN].set(p["type_emb"][0])
    gsm = gsm.at[3, :HIDDEN].set(p["dense_b"])

    wqkv, wo, wi, wf, lsm = [], [], [], [], []
    for lyr in p["layers"]:
        w_qkv = jnp.concatenate([lyr["wq"], lyr["wk"], lyr["wv"]], axis=1)  # (32,96)
        b_qkv = jnp.concatenate([lyr["bq"], lyr["bk"], lyr["bv"]])          # (96,)
        wqkv.append(_pad2(w_qkv).astype(bf16))
        wo.append(_pad2(lyr["wo"]).astype(bf16))
        wi.append(_pad2(lyr["wi"]).astype(bf16))
        wf.append(_pad2(lyr["wf"]).astype(bf16))
        sm = jnp.zeros((8, HP), jnp.float32)
        sm = sm.at[0, :b_qkv.shape[0]].set(b_qkv)   # qkv bias
        sm = sm.at[1, :HIDDEN].set(lyr["bo"])       # attn output bias
        sm = sm.at[2, :HIDDEN].set(lyr["ln1_g"])
        sm = sm.at[3, :HIDDEN].set(lyr["ln1_b"])
        sm = sm.at[4, :INTER].set(lyr["bi"])        # FFN intermediate bias
        sm = sm.at[5, :HIDDEN].set(lyr["bf"])       # FFN output bias
        sm = sm.at[6, :HIDDEN].set(lyr["ln2_g"])
        sm = sm.at[7, :HIDDEN].set(lyr["ln2_b"])
        lsm.append(sm)

    stk = lambda xs: jnp.stack(xs, axis=0)
    return (wtab, ptab, stk(wqkv), stk(wo), stk(wi), stk(wf),
            _pad2(p["dense_w"]).astype(bf16), stk(lsm), gsm)


# ----------------------- parameters -----------------------
def init_params(key):
    def normal(k, shape, scale=0.02):
        return scale * jax.random.normal(k, shape, dtype=jnp.float32)

    keys = iter(jax.random.split(key, 8 * LAYERS + 16))
    params = {}
    we = normal(next(keys), (VOCAB, HIDDEN))
    params["word_emb"] = we.at[PAD_ID].set(0.0)     # padding_idx row zeroed
    params["pos_emb"] = normal(next(keys), (MAX_POS, HIDDEN))
    params["type_emb"] = normal(next(keys), (1, HIDDEN))
    params["emb_ln_g"] = jnp.ones((HIDDEN,), jnp.float32)
    params["emb_ln_b"] = jnp.zeros((HIDDEN,), jnp.float32)

    layers = []
    for _ in range(LAYERS):
        lyr = dict(
            wq=normal(next(keys), (HIDDEN, HIDDEN)), bq=jnp.zeros((HIDDEN,), jnp.float32),
            wk=normal(next(keys), (HIDDEN, HIDDEN)), bk=jnp.zeros((HIDDEN,), jnp.float32),
            wv=normal(next(keys), (HIDDEN, HIDDEN)), bv=jnp.zeros((HIDDEN,), jnp.float32),
            wo=normal(next(keys), (HIDDEN, HIDDEN)), bo=jnp.zeros((HIDDEN,), jnp.float32),
            ln1_g=jnp.ones((HIDDEN,), jnp.float32), ln1_b=jnp.zeros((HIDDEN,), jnp.float32),
            wi=normal(next(keys), (HIDDEN, INTER)), bi=jnp.zeros((INTER,), jnp.float32),
            wf=normal(next(keys), (INTER, HIDDEN)), bf=jnp.zeros((HIDDEN,), jnp.float32),
            ln2_g=jnp.ones((HIDDEN,), jnp.float32), ln2_b=jnp.zeros((HIDDEN,), jnp.float32),
        )
        layers.append(lyr)
    params["layers"] = layers

    params["dense_w"] = normal(next(keys), (HIDDEN, HIDDEN))
    params["dense_b"] = jnp.zeros((HIDDEN,), jnp.float32)
    return params


# ----------------------- forward -----------------------
def smiles_forward(params, inp, num_groups=NUM_GROUPS):
    # inp: (B, S, 2) int32 -- [:, :, 0] = input_ids, [:, :, 1] = attention_mask
    input_ids = inp[:, :, 0]
    attn_mask = inp[:, :, 1]
    B, S = input_ids.shape
    G = num_groups
    assert B % G == 0
    Bg = B // G
    M = Bg * S

    # RoBERTa position ids: cumsum over non-pad tokens, offset by padding_idx.
    # TODO(synk): tiny int glue (cumsum / mask build) stays in JAX; everything
    # heavier (gathers, matmuls, LN, attention, norm) is inside the kernel.
    nonpad = (input_ids != PAD_ID).astype(jnp.int32)
    position_ids = jnp.cumsum(nonpad, axis=1) * nonpad + PAD_ID
    tok = jnp.stack([input_ids, position_ids], axis=-1).astype(jnp.int32)
    tok = tok.reshape(G, M, 2)

    # Folded-batch additive attention bias: block-diagonal across sequences and
    # -1e9 on padded keys (equivalent to finfo.min after max-subtraction).
    key_valid = (attn_mask > 0).reshape(G, M)
    seq_of = jnp.arange(M, dtype=jnp.int32) // S
    same_seq = seq_of[:, None] == seq_of[None, :]
    bias = jnp.where(same_seq[None, :, :] & key_valid[:, None, :],
                     0.0, -1e9).astype(jnp.float32)                  # (G, M, M)

    packed = _pack_params(params)

    def rep(shape):
        nd = len(shape)
        return pl.BlockSpec(shape, lambda g, _nd=nd: (0,) * _nd)

    in_specs = [
        pl.BlockSpec((1, M, 2), lambda g: (g, 0, 0)),     # word/pos ids
        pl.BlockSpec((1, M, M), lambda g: (g, 0, 0)),     # attention bias
        rep((VOCAB_PAD, HP)),                             # word table (bf16)
        rep((POS_PAD, HP)),                               # pos table (bf16)
        rep((LAYERS, HP, HP)),                            # wqkv
        rep((LAYERS, HP, HP)),                            # wo
        rep((LAYERS, HP, HP)),                            # wi
        rep((LAYERS, HP, HP)),                            # wf
        rep((HP, HP)),                                    # dense w
        rep((LAYERS, 8, HP)),                             # per-layer biases/LN
        rep((8, HP)),                                     # global smalls
    ]

    out = pl.pallas_call(
        functools.partial(_fused_kernel, seq_len=S),
        out_shape=jax.ShapeDtypeStruct((G, Bg, HP), jnp.float32),
        grid=(G,),
        in_specs=in_specs,
        out_specs=pl.BlockSpec((1, Bg, HP), lambda g: (g, 0, 0)),
        compiler_params=pltpu.CompilerParams(
            dimension_semantics=("parallel",)),   # v7x: set NUM_GROUPS=2
    )(tok, bias, *packed)

    return out.reshape(B, HP)[:, :HIDDEN]


# ----------------------- main -----------------------
if __name__ == "__main__":
    key = jax.random.PRNGKey(0)
    kp, kd = jax.random.split(key)
    params = init_params(kp)

    B, S = 2, 8
    ids = jax.random.randint(kd, (B, S), 3, VOCAB, dtype=jnp.int32)
    ids = ids.at[:, 0].set(0)                 # <s> / CLS token
    mask = jnp.ones((B, S), dtype=jnp.int32)
    ids = ids.at[1, 6:].set(PAD_ID)           # pad tail of second sequence
    mask = mask.at[1, 6:].set(0)
    inp = jnp.stack([ids, mask], axis=-1)     # (B, S, 2) int32

    fwd = jax.jit(functools.partial(smiles_forward, params))
    out = jax.block_until_ready(fwd(inp))
    assert out.shape == (B, HIDDEN)
    assert bool(jnp.all(jnp.isfinite(out)))
    # unit-norm check
    assert bool(jnp.allclose(jnp.linalg.norm(out, axis=-1), 1.0, atol=1e-4))
    print("KERNEL_OK")
</pallas_src>

<mosaic_0001>
module attributes {stable_mosaic.version = 11 : i64} {
  func.func @_fused_kernel(%arg0: i32, %arg1: memref<1x16x2xi32, #tpu.memory_space<vmem>>, %arg2: memref<1x16x16xf32, #tpu.memory_space<vmem>>, %arg3: memref<256x128xbf16, #tpu.memory_space<vmem>>, %arg4: memref<128x128xbf16, #tpu.memory_space<vmem>>, %arg5: memref<2x128x128xbf16, #tpu.memory_space<vmem>>, %arg6: memref<2x128x128xbf16, #tpu.memory_space<vmem>>, %arg7: memref<2x128x128xbf16, #tpu.memory_space<vmem>>, %arg8: memref<2x128x128xbf16, #tpu.memory_space<vmem>>, %arg9: memref<128x128xbf16, #tpu.memory_space<vmem>>, %arg10: memref<2x8x128xf32, #tpu.memory_space<vmem>>, %arg11: memref<8x128xf32, #tpu.memory_space<vmem>>, %arg12: memref<1x2x128xf32, #tpu.memory_space<vmem>>) attributes {dimension_semantics = [#tpu.dimension_semantics<parallel>], iteration_bounds = array<i64: 1>, scalar_prefetch = 0 : i64, scratch_operands = 0 : i64, tpu.core_type = #tpu.core_type<tc>, window_params = [{transform_indices = @transform_0, window_bounds = array<i64: 1, 16, 2>}, {transform_indices = @transform_1, window_bounds = array<i64: 1, 16, 16>}, {pipeline_mode = #tpu.pipeline_mode<synchronous>, transform_indices = @transform_2, window_bounds = array<i64: 256, 128>}, {pipeline_mode = #tpu.pipeline_mode<synchronous>, transform_indices = @transform_3, window_bounds = array<i64: 128, 128>}, {pipeline_mode = #tpu.pipeline_mode<synchronous>, transform_indices = @transform_4, window_bounds = array<i64: 2, 128, 128>}, {pipeline_mode = #tpu.pipeline_mode<synchronous>, transform_indices = @transform_5, window_bounds = array<i64: 2, 128, 128>}, {pipeline_mode = #tpu.pipeline_mode<synchronous>, transform_indices = @transform_6, window_bounds = array<i64: 2, 128, 128>}, {pipeline_mode = #tpu.pipeline_mode<synchronous>, transform_indices = @transform_7, window_bounds = array<i64: 2, 128, 128>}, {pipeline_mode = #tpu.pipeline_mode<synchronous>, transform_indices = @transform_8, window_bounds = array<i64: 128, 128>}, {pipeline_mode = #tpu.pipeline_mode<synchronous>, transform_indices = @transform_9, window_bounds = array<i64: 2, 8, 128>}, {pipeline_mode = #tpu.pipeline_mode<synchronous>, transform_indices = @transform_10, window_bounds = array<i64: 8, 128>}, {transform_indices = @transform_11, window_bounds = array<i64: 1, 2, 128>}]} {
    %c0 = arith.constant 0 : index
    %c0_0 = arith.constant 0 : index
    %c0_1 = arith.constant 0 : index
    %0 = vector.load %arg1[%c0, %c0_0, %c0_1] : memref<1x16x2xi32, #tpu.memory_space<vmem>>, vector<1x16x2xi32>
    %1 = vector.shape_cast %0 : vector<1x16x2xi32> to vector<16x2xi32>
    %2 = vector.extract_strided_slice %1 {offsets = [0, 0], sizes = [16, 1], strides = [1, 1]} : vector<16x2xi32> to vector<16x1xi32>
    %3 = vector.extract_strided_slice %1 {offsets = [0, 1], sizes = [16, 1], strides = [1, 1]} : vector<16x2xi32> to vector<16x1xi32>
    %4 = tpu.iota {dimensions = array<i32: 1>} : vector<1x256xi32>
    %5 = tpu.iota {dimensions = array<i32: 1>} : vector<1x128xi32>
    %6 = vector.broadcast %2 : vector<16x1xi32> to vector<16x256xi32>
    %7 = vector.broadcast %4 : vector<1x256xi32> to vector<16x256xi32>
    %8 = arith.cmpi eq, %6, %7 : vector<16x256xi32>
    %cst = arith.constant 1.000000e+00 : f32
    %cst_2 = arith.constant 0.000000e+00 : f32
    %9 = vector.broadcast %cst : f32 to vector<16x256xf32>
    %10 = vector.broadcast %cst_2 : f32 to vector<16x256xf32>
    %11 = arith.select %8, %9, %10 : vector<16x256xi1>, vector<16x256xf32>
    %12 = arith.truncf %11 : vector<16x256xf32> to vector<16x256xbf16>
    %13 = vector.broadcast %3 : vector<16x1xi32> to vector<16x128xi32>
    %14 = vector.broadcast %5 : vector<1x128xi32> to vector<16x128xi32>
    %15 = arith.cmpi eq, %13, %14 : vector<16x128xi32>
    %cst_3 = arith.constant 1.000000e+00 : f32
    %cst_4 = arith.constant 0.000000e+00 : f32
    %16 = vector.broadcast %cst_3 : f32 to vector<16x128xf32>
    %17 = vector.broadcast %cst_4 : f32 to vector<16x128xf32>
    %18 = arith.select %15, %16, %17 : vector<16x128xi1>, vector<16x128xf32>
    %19 = arith.truncf %18 : vector<16x128xf32> to vector<16x128xbf16>
    %c0_5 = arith.constant 0 : index
    %c0_6 = arith.constant 0 : index
    %20 = vector.load %arg3[%c0_5, %c0_6] : memref<256x128xbf16, #tpu.memory_space<vmem>>, vector<256x128xbf16>
    %cst_7 = arith.constant dense<0.000000e+00> : vector<16x128xf32>
    %21 = tpu.matmul %12, %20, %cst_7 {dimension_numbers = #tpu.dot_dimension_numbers<[1], [0], [0], [1], [0, 0, 1, 1], [], []>} : vector<16x256xbf16>, vector<256x128xbf16>, vector<16x128xf32> -> vector<16x128xf32>
    %c0_8 = arith.constant 0 : index
    %c0_9 = arith.constant 0 : index
    %22 = vector.load %arg4[%c0_8, %c0_9] : memref<128x128xbf16, #tpu.memory_space<vmem>>, vector<128x128xbf16>
    %cst_10 = arith.constant dense<0.000000e+00> : vector<16x128xf32>
    %23 = tpu.matmul %19, %22, %cst_10 {dimension_numbers = #tpu.dot_dimension_numbers<[1], [0], [0], [1], [0, 0, 1, 1], [], []>} : vector<16x128xbf16>, vector<128x128xbf16>, vector<16x128xf32> -> vector<16x128xf32>
    %24 = arith.addf %21, %23 : vector<16x128xf32>
    %c2 = arith.constant 2 : index
    %c0_11 = arith.constant 0 : index
    %25 = vector.load %arg11[%c2, %c0_11] : memref<8x128xf32, #tpu.memory_space<vmem>>, vector<1x128xf32>
    %26 = vector.broadcast %25 : vector<1x128xf32> to vector<16x128xf32>
    %27 = arith.addf %24, %26 : vector<16x128xf32>
    %c0_12 = arith.constant 0 : index
    %c0_13 = arith.constant 0 : index
    %28 = vector.load %arg11[%c0_12, %c0_13] : memref<8x128xf32, #tpu.memory_space<vmem>>, vector<1x128xf32>
    %c1 = arith.constant 1 : index
    %c0_14 = arith.constant 0 : index
    %29 = vector.load %arg11[%c1, %c0_14] : memref<8x128xf32, #tpu.memory_space<vmem>>, vector<1x128xf32>
    %cst_15 = arith.constant dense<0.000000e+00> : vector<16xf32>
    %30 = vector.multi_reduction <add>, %27, %cst_15 [1] : vector<16x128xf32> to vector<16xf32>
    %31 = vector.shape_cast %30 : vector<16xf32> to vector<16x1xf32>
    %cst_16 = arith.constant 3.125000e-02 : f32
    %32 = vector.broadcast %cst_16 : f32 to vector<16x1xf32>
    %33 = arith.mulf %31, %32 : vector<16x1xf32>
    %34 = arith.mulf %27, %27 : vector<16x128xf32>
    %cst_17 = arith.constant dense<0.000000e+00> : vector<16xf32>
    %35 = vector.multi_reduction <add>, %34, %cst_17 [1] : vector<16x128xf32> to vector<16xf32>
    %36 = vector.shape_cast %35 : vector<16xf32> to vector<16x1xf32>
    %cst_18 = arith.constant 3.125000e-02 : f32
    %37 = vector.broadcast %cst_18 : f32 to vector<16x1xf32>
    %38 = arith.mulf %36, %37 : vector<16x1xf32>
    %39 = arith.mulf %33, %33 : vector<16x1xf32>
    %40 = arith.subf %38, %39 : vector<16x1xf32>
    %41 = vector.broadcast %33 : vector<16x1xf32> to vector<16x128xf32>
    %42 = arith.subf %27, %41 : vector<16x128xf32>
    %cst_19 = arith.constant 9.99999996E-13 : f32
    %43 = vector.broadcast %cst_19 : f32 to vector<16x1xf32>
    %44 = arith.addf %40, %43 : vector<16x1xf32>
    %45 = math.rsqrt %44 : vector<16x1xf32>
    %46 = vector.broadcast %45 : vector<16x1xf32> to vector<16x128xf32>
    %47 = arith.mulf %42, %46 : vector<16x128xf32>
    %48 = vector.broadcast %28 : vector<1x128xf32> to vector<16x128xf32>
    %49 = arith.mulf %47, %48 : vector<16x128xf32>
    %50 = vector.broadcast %29 : vector<1x128xf32> to vector<16x128xf32>
    %51 = arith.addf %49, %50 : vector<16x128xf32>
    %c0_20 = arith.constant 0 : index
    %c0_21 = arith.constant 0 : index
    %c0_22 = arith.constant 0 : index
    %52 = vector.load %arg2[%c0_20, %c0_21, %c0_22] : memref<1x16x16xf32, #tpu.memory_space<vmem>>, vector<1x16x16xf32>
    %53 = vector.shape_cast %52 : vector<1x16x16xf32> to vector<16x16xf32>
    %cst_23 = arith.constant 0.000000e+00 : f32
    %54 = vector.broadcast %cst_23 : f32 to vector<16x96xf32>
    %c0_24 = arith.constant 0 : index
    %c0_25 = arith.constant 0 : index
    %c0_26 = arith.constant 0 : index
    %55 = vector.load %arg10[%c0_24, %c0_25, %c0_26] : memref<2x8x128xf32, #tpu.memory_space<vmem>>, vector<1x8x128xf32>
    %56 = vector.shape_cast %55 : vector<1x8x128xf32> to vector<8x128xf32>
    %57 = arith.truncf %51 : vector<16x128xf32> to vector<16x128xbf16>
    %c0_27 = arith.constant 0 : index
    %c0_28 = arith.constant 0 : index
    %c0_29 = arith.constant 0 : index
    %58 = vector.load %arg5[%c0_27, %c0_28, %c0_29] : memref<2x128x128xbf16, #tpu.memory_space<vmem>>, vector<1x128x128xbf16>
    %59 = vector.shape_cast %58 : vector<1x128x128xbf16> to vector<128x128xbf16>
    %cst_30 = arith.constant dense<0.000000e+00> : vector<16x128xf32>
    %60 = tpu.matmul %57, %59, %cst_30 {dimension_numbers = #tpu.dot_dimension_numbers<[1], [0], [0], [1], [0, 0, 1, 1], [], []>} : vector<16x128xbf16>, vector<128x128xbf16>, vector<16x128xf32> -> vector<16x128xf32>
    %61 = vector.extract_strided_slice %56 {offsets = [0, 0], sizes = [1, 128], strides = [1, 1]} : vector<8x128xf32> to vector<1x128xf32>
    %62 = vector.broadcast %61 : vector<1x128xf32> to vector<16x128xf32>
    %63 = arith.addf %60, %62 : vector<16x128xf32>
    %64 = vector.extract_strided_slice %63 {offsets = [0, 0], sizes = [16, 8], strides = [1, 1]} : vector<16x128xf32> to vector<16x8xf32>
    %65 = arith.truncf %64 : vector<16x8xf32> to vector<16x8xbf16>
    %66 = vector.extract_strided_slice %63 {offsets = [0, 32], sizes = [16, 8], strides = [1, 1]} : vector<16x128xf32> to vector<16x8xf32>
    %67 = arith.truncf %66 : vector<16x8xf32> to vector<16x8xbf16>
    %68 = vector.extract_strided_slice %63 {offsets = [0, 64], sizes = [16, 8], strides = [1, 1]} : vector<16x128xf32> to vector<16x8xf32>
    %69 = arith.truncf %68 : vector<16x8xf32> to vector<16x8xbf16>
    %cst_31 = arith.constant dense<0.000000e+00> : vector<16x16xf32>
    %70 = tpu.matmul %65, %67, %cst_31 {dimension_numbers = #tpu.dot_dimension_numbers<[1], [1], [0], [0], [0, 0, 1, 0], [], []>} : vector<16x8xbf16>, vector<16x8xbf16>, vector<16x16xf32> -> vector<16x16xf32>
    %cst_32 = arith.constant 0.353553385 : f32
    %71 = vector.broadcast %cst_32 : f32 to vector<16x16xf32>
    %72 = arith.mulf %70, %71 : vector<16x16xf32>
    %73 = arith.addf %72, %53 : vector<16x16xf32>
    %cst_33 = arith.constant dense<0xFF800000> : vector<16xf32>
    %74 = vector.multi_reduction <maximumf>, %73, %cst_33 [1] : vector<16x16xf32> to vector<16xf32>
    %75 = vector.shape_cast %74 : vector<16xf32> to vector<16x1xf32>
    %76 = vector.broadcast %75 : vector<16x1xf32> to vector<16x16xf32>
    %77 = arith.subf %73, %76 : vector<16x16xf32>
    %78 = math.exp %77 : vector<16x16xf32>
    %cst_34 = arith.constant dense<0.000000e+00> : vector<16xf32>
    %79 = vector.multi_reduction <add>, %78, %cst_34 [1] : vector<16x16xf32> to vector<16xf32>
    %80 = vector.shape_cast %79 : vector<16xf32> to vector<16x1xf32>
    %81 = tpu.reciprocal %80 : vector<16x1xf32> -> vector<16x1xf32>
    %82 = vector.broadcast %81 : vector<16x1xf32> to vector<16x16xf32>
    %83 = arith.mulf %78, %82 : vector<16x16xf32>
    %84 = arith.truncf %83 : vector<16x16xf32> to vector<16x16xbf16>
    %cst_35 = arith.constant dense<0.000000e+00> : vector<16x8xf32>
    %85 = tpu.matmul %84, %69, %cst_35 {dimension_numbers = #tpu.dot_dimension_numbers<[1], [0], [0], [1], [0, 0, 1, 1], [], []>} : vector<16x16xbf16>, vector<16x8xbf16>, vector<16x8xf32> -> vector<16x8xf32>
    %86 = vector.extract_strided_slice %63 {offsets = [0, 8], sizes = [16, 8], strides = [1, 1]} : vector<16x128xf32> to vector<16x8xf32>
    %87 = arith.truncf %86 : vector<16x8xf32> to vector<16x8xbf16>
    %88 = vector.extract_strided_slice %63 {offsets = [0, 40], sizes = [16, 8], strides = [1, 1]} : vector<16x128xf32> to vector<16x8xf32>
    %89 = arith.truncf %88 : vector<16x8xf32> to vector<16x8xbf16>
    %90 = vector.extract_strided_slice %63 {offsets = [0, 72], sizes = [16, 8], strides = [1, 1]} : vector<16x128xf32> to vector<16x8xf32>
    %91 = arith.truncf %90 : vector<16x8xf32> to vector<16x8xbf16>
    %cst_36 = arith.constant dense<0.000000e+00> : vector<16x16xf32>
    %92 = tpu.matmul %87, %89, %cst_36 {dimension_numbers = #tpu.dot_dimension_numbers<[1], [1], [0], [0], [0, 0, 1, 0], [], []>} : vector<16x8xbf16>, vector<16x8xbf16>, vector<16x16xf32> -> vector<16x16xf32>
    %cst_37 = arith.constant 0.353553385 : f32
    %93 = vector.broadcast %cst_37 : f32 to vector<16x16xf32>
    %94 = arith.mulf %92, %93 : vector<16x16xf32>
    %95 = arith.addf %94, %53 : vector<16x16xf32>
    %cst_38 = arith.constant dense<0xFF800000> : vector<16xf32>
    %96 = vector.multi_reduction <maximumf>, %95, %cst_38 [1] : vector<16x16xf32> to vector<16xf32>
    %97 = vector.shape_cast %96 : vector<16xf32> to vector<16x1xf32>
    %98 = vector.broadcast %97 : vector<16x1xf32> to vector<16x16xf32>
    %99 = arith.subf %95, %98 : vector<16x16xf32>
    %100 = math.exp %99 : vector<16x16xf32>
    %cst_39 = arith.constant dense<0.000000e+00> : vector<16xf32>
    %101 = vector.multi_reduction <add>, %100, %cst_39 [1] : vector<16x16xf32> to vector<16xf32>
    %102 = vector.shape_cast %101 : vector<16xf32> to vector<16x1xf32>
    %103 = tpu.reciprocal %102 : vector<16x1xf32> -> vector<16x1xf32>
    %104 = vector.broadcast %103 : vector<16x1xf32> to vector<16x16xf32>
    %105 = arith.mulf %100, %104 : vector<16x16xf32>
    %106 = arith.truncf %105 : vector<16x16xf32> to vector<16x16xbf16>
    %cst_40 = arith.constant dense<0.000000e+00> : vector<16x8xf32>
    %107 = tpu.matmul %106, %91, %cst_40 {dimension_numbers = #tpu.dot_dimension_numbers<[1], [0], [0], [1], [0, 0, 1, 1], [], []>} : vector<16x16xbf16>, vector<16x8xbf16>, vector<16x8xf32> -> vector<16x8xf32>
    %108 = vector.extract_strided_slice %63 {offsets = [0, 16], sizes = [16, 8], strides = [1, 1]} : vector<16x128xf32> to vector<16x8xf32>
    %109 = arith.truncf %108 : vector<16x8xf32> to vector<16x8xbf16>
    %110 = vector.extract_strided_slice %63 {offsets = [0, 48], sizes = [16, 8], strides = [1, 1]} : vector<16x128xf32> to vector<16x8xf32>
    %111 = arith.truncf %110 : vector<16x8xf32> to vector<16x8xbf16>
    %112 = vector.extract_strided_slice %63 {offsets = [0, 80], sizes = [16, 8], strides = [1, 1]} : vector<16x128xf32> to vector<16x8xf32>
    %113 = arith.truncf %112 : vector<16x8xf32> to vector<16x8xbf16>
    %cst_41 = arith.constant dense<0.000000e+00> : vector<16x16xf32>
    %114 = tpu.matmul %109, %111, %cst_41 {dimension_numbers = #tpu.dot_dimension_numbers<[1], [1], [0], [0], [0, 0, 1, 0], [], []>} : vector<16x8xbf16>, vector<16x8xbf16>, vector<16x16xf32> -> vector<16x16xf32>
    %cst_42 = arith.constant 0.353553385 : f32
    %115 = vector.broadcast %cst_42 : f32 to vector<16x16xf32>
    %116 = arith.mulf %114, %115 : vector<16x16xf32>
    %117 = arith.addf %116, %53 : vector<16x16xf32>
    %cst_43 = arith.constant dense<0xFF800000> : vector<16xf32>
    %118 = vector.multi_reduction <maximumf>, %117, %cst_43 [1] : vector<16x16xf32> to vector<16xf32>
    %119 = vector.shape_cast %118 : vector<16xf32> to vector<16x1xf32>
    %120 = vector.broadcast %119 : vector<16x1xf32> to vector<16x16xf32>
    %121 = arith.subf %117, %120 : vector<16x16xf32>
    %122 = math.exp %121 : vector<16x16xf32>
    %cst_44 = arith.constant dense<0.000000e+00> : vector<16xf32>
    %123 = vector.multi_reduction <add>, %122, %cst_44 [1] : vector<16x16xf32> to vector<16xf32>
    %124 = vector.shape_cast %123 : vector<16xf32> to vector<16x1xf32>
    %125 = tpu.reciprocal %124 : vector<16x1xf32> -> vector<16x1xf32>
    %126 = vector.broadcast %125 : vector<16x1xf32> to vector<16x16xf32>
    %127 = arith.mulf %122, %126 : vector<16x16xf32>
    %128 = arith.truncf %127 : vector<16x16xf32> to vector<16x16xbf16>
    %cst_45 = arith.constant dense<0.000000e+00> : vector<16x8xf32>
    %129 = tpu.matmul %128, %113, %cst_45 {dimension_numbers = #tpu.dot_dimension_numbers<[1], [0], [0], [1], [0, 0, 1, 1], [], []>} : vector<16x16xbf16>, vector<16x8xbf16>, vector<16x8xf32> -> vector<16x8xf32>
    %130 = vector.extract_strided_slice %63 {offsets = [0, 24], sizes = [16, 8], strides = [1, 1]} : vector<16x128xf32> to vector<16x8xf32>
    %131 = arith.truncf %130 : vector<16x8xf32> to vector<16x8xbf16>
    %132 = vector.extract_strided_slice %63 {offsets = [0, 56], sizes = [16, 8], strides = [1, 1]} : vector<16x128xf32> to vector<16x8xf32>
    %133 = arith.truncf %132 : vector<16x8xf32> to vector<16x8xbf16>
    %134 = vector.extract_strided_slice %63 {offsets = [0, 88], sizes = [16, 8], strides = [1, 1]} : vector<16x128xf32> to vector<16x8xf32>
    %135 = arith.truncf %134 : vector<16x8xf32> to vector<16x8xbf16>
    %cst_46 = arith.constant dense<0.000000e+00> : vector<16x16xf32>
    %136 = tpu.matmul %131, %133, %cst_46 {dimension_numbers = #tpu.dot_dimension_numbers<[1], [1], [0], [0], [0, 0, 1, 0], [], []>} : vector<16x8xbf16>, vector<16x8xbf16>, vector<16x16xf32> -> vector<16x16xf32>
    %cst_47 = arith.constant 0.353553385 : f32
    %137 = vector.broadcast %cst_47 : f32 to vector<16x16xf32>
    %138 = arith.mulf %136, %137 : vector<16x16xf32>
    %139 = arith.addf %138, %53 : vector<16x16xf32>
    %cst_48 = arith.constant dense<0xFF800000> : vector<16xf32>
    %140 = vector.multi_reduction <maximumf>, %139, %cst_48 [1] : vector<16x16xf32> to vector<16xf32>
    %141 = vector.shape_cast %140 : vector<16xf32> to vector<16x1xf32>
    %142 = vector.broadcast %141 : vector<16x1xf32> to vector<16x16xf32>
    %143 = arith.subf %139, %142 : vector<16x16xf32>
    %144 = math.exp %143 : vector<16x16xf32>
    %cst_49 = arith.constant dense<0.000000e+00> : vector<16xf32>
    %145 = vector.multi_reduction <add>, %144, %cst_49 [1] : vector<16x16xf32> to vector<16xf32>
    %146 = vector.shape_cast %145 : vector<16xf32> to vector<16x1xf32>
    %147 = tpu.reciprocal %146 : vector<16x1xf32> -> vector<16x1xf32>
    %148 = vector.broadcast %147 : vector<16x1xf32> to vector<16x16xf32>
    %149 = arith.mulf %144, %148 : vector<16x16xf32>
    %150 = arith.truncf %149 : vector<16x16xf32> to vector<16x16xbf16>
    %cst_50 = arith.constant dense<0.000000e+00> : vector<16x8xf32>
    %151 = tpu.matmul %150, %135, %cst_50 {dimension_numbers = #tpu.dot_dimension_numbers<[1], [0], [0], [1], [0, 0, 1, 1], [], []>} : vector<16x16xbf16>, vector<16x8xbf16>, vector<16x8xf32> -> vector<16x8xf32>
    %152 = tpu.concatenate %85, %107, %129, %151, %54 in 1 : vector<16x8xf32>, vector<16x8xf32>, vector<16x8xf32>, vector<16x8xf32>, vector<16x96xf32> -> vector<16x128xf32>
    %153 = arith.truncf %152 : vector<16x128xf32> to vector<16x128xbf16>
    %c0_51 = arith.constant 0 : index
    %c0_52 = arith.constant 0 : index
    %c0_53 = arith.constant 0 : index
    %154 = vector.load %arg6[%c0_51, %c0_52, %c0_53] : memref<2x128x128xbf16, #tpu.memory_space<vmem>>, vector<1x128x128xbf16>
    %155 = vector.shape_cast %154 : vector<1x128x128xbf16> to vector<128x128xbf16>
    %cst_54 = arith.constant dense<0.000000e+00> : vector<16x128xf32>
    %156 = tpu.matmul %153, %155, %cst_54 {dimension_numbers = #tpu.dot_dimension_numbers<[1], [0], [0], [1], [0, 0, 1, 1], [], []>} : vector<16x128xbf16>, vector<128x128xbf16>, vector<16x128xf32> -> vector<16x128xf32>
    %157 = vector.extract_strided_slice %56 {offsets = [1, 0], sizes = [1, 128], strides = [1, 1]} : vector<8x128xf32> to vector<1x128xf32>
    %158 = vector.broadcast %157 : vector<1x128xf32> to vector<16x128xf32>
    %159 = arith.addf %156, %158 : vector<16x128xf32>
    %160 = arith.addf %159, %51 : vector<16x128xf32>
    %161 = vector.extract_strided_slice %56 {offsets = [2, 0], sizes = [1, 128], strides = [1, 1]} : vector<8x128xf32> to vector<1x128xf32>
    %162 = vector.extract_strided_slice %56 {offsets = [3, 0], sizes = [1, 128], strides = [1, 1]} : vector<8x128xf32> to vector<1x128xf32>
    %cst_55 = arith.constant dense<0.000000e+00> : vector<16xf32>
    %163 = vector.multi_reduction <add>, %160, %cst_55 [1] : vector<16x128xf32> to vector<16xf32>
    %164 = vector.shape_cast %163 : vector<16xf32> to vector<16x1xf32>
    %cst_56 = arith.constant 3.125000e-02 : f32
    %165 = vector.broadcast %cst_56 : f32 to vector<16x1xf32>
    %166 = arith.mulf %164, %165 : vector<16x1xf32>
    %167 = arith.mulf %160, %160 : vector<16x128xf32>
    %cst_57 = arith.constant dense<0.000000e+00> : vector<16xf32>
    %168 = vector.multi_reduction <add>, %167, %cst_57 [1] : vector<16x128xf32> to vector<16xf32>
    %169 = vector.shape_cast %168 : vector<16xf32> to vector<16x1xf32>
    %cst_58 = arith.constant 3.125000e-02 : f32
    %170 = vector.broadcast %cst_58 : f32 to vector<16x1xf32>
    %171 = arith.mulf %169, %170 : vector<16x1xf32>
    %172 = arith.mulf %166, %166 : vector<16x1xf32>
    %173 = arith.subf %171, %172 : vector<16x1xf32>
    %174 = vector.broadcast %166 : vector<16x1xf32> to vector<16x128xf32>
    %175 = arith.subf %160, %174 : vector<16x128xf32>
    %cst_59 = arith.constant 9.99999996E-13 : f32
    %176 = vector.broadcast %cst_59 : f32 to vector<16x1xf32>
    %177 = arith.addf %173, %176 : vector<16x1xf32>
    %178 = math.rsqrt %177 : vector<16x1xf32>
    %179 = vector.broadcast %178 : vector<16x1xf32> to vector<16x128xf32>
    %180 = arith.mulf %175, %179 : vector<16x128xf32>
    %181 = vector.broadcast %161 : vector<1x128xf32> to vector<16x128xf32>
    %182 = arith.mulf %180, %181 : vector<16x128xf32>
    %183 = vector.broadcast %162 : vector<1x128xf32> to vector<16x128xf32>
    %184 = arith.addf %182, %183 : vector<16x128xf32>
    %185 = arith.truncf %184 : vector<16x128xf32> to vector<16x128xbf16>
    %c0_60 = arith.constant 0 : index
    %c0_61 = arith.constant 0 : index
    %c0_62 = arith.constant 0 : index
    %186 = vector.load %arg7[%c0_60, %c0_61, %c0_62] : memref<2x128x128xbf16, #tpu.memory_space<vmem>>, vector<1x128x128xbf16>
    %187 = vector.shape_cast %186 : vector<1x128x128xbf16> to vector<128x128xbf16>
    %cst_63 = arith.constant dense<0.000000e+00> : vector<16x128xf32>
    %188 = tpu.matmul %185, %187, %cst_63 {dimension_numbers = #tpu.dot_dimension_numbers<[1], [0], [0], [1], [0, 0, 1, 1], [], []>} : vector<16x128xbf16>, vector<128x128xbf16>, vector<16x128xf32> -> vector<16x128xf32>
    %189 = vector.extract_strided_slice %56 {offsets = [4, 0], sizes = [1, 128], strides = [1, 1]} : vector<8x128xf32> to vector<1x128xf32>
    %190 = vector.broadcast %189 : vector<1x128xf32> to vector<16x128xf32>
    %191 = arith.addf %188, %190 : vector<16x128xf32>
    %cst_64 = arith.constant 5.000000e-01 : f32
    %192 = vector.broadcast %cst_64 : f32 to vector<16x128xf32>
    %193 = arith.mulf %192, %191 : vector<16x128xf32>
    %cst_65 = arith.constant 0.707106769 : f32
    %194 = vector.broadcast %cst_65 : f32 to vector<16x128xf32>
    %195 = arith.mulf %191, %194 : vector<16x128xf32>
    %196 = math.erf %195 : vector<16x128xf32>
    %cst_66 = arith.constant 1.000000e+00 : f32
    %197 = vector.broadcast %cst_66 : f32 to vector<16x128xf32>
    %198 = arith.addf %197, %196 : vector<16x128xf32>
    %199 = arith.mulf %193, %198 : vector<16x128xf32>
    %200 = arith.truncf %199 : vector<16x128xf32> to vector<16x128xbf16>
    %c0_67 = arith.constant 0 : index
    %c0_68 = arith.constant 0 : index
    %c0_69 = arith.constant 0 : index
    %201 = vector.load %arg8[%c0_67, %c0_68, %c0_69] : memref<2x128x128xbf16, #tpu.memory_space<vmem>>, vector<1x128x128xbf16>
    %202 = vector.shape_cast %201 : vector<1x128x128xbf16> to vector<128x128xbf16>
    %cst_70 = arith.constant dense<0.000000e+00> : vector<16x128xf32>
    %203 = tpu.matmul %200, %202, %cst_70 {dimension_numbers = #tpu.dot_dimension_numbers<[1], [0], [0], [1], [0, 0, 1, 1], [], []>} : vector<16x128xbf16>, vector<128x128xbf16>, vector<16x128xf32> -> vector<16x128xf32>
    %204 = vector.extract_strided_slice %56 {offsets = [5, 0], sizes = [1, 128], strides = [1, 1]} : vector<8x128xf32> to vector<1x128xf32>
    %205 = vector.broadcast %204 : vector<1x128xf32> to vector<16x128xf32>
    %206 = arith.addf %203, %205 : vector<16x128xf32>
    %207 = arith.addf %206, %184 : vector<16x128xf32>
    %208 = vector.extract_strided_slice %56 {offsets = [6, 0], sizes = [1, 128], strides = [1, 1]} : vector<8x128xf32> to vector<1x128xf32>
    %209 = vector.extract_strided_slice %56 {offsets = [7, 0], sizes = [1, 128], strides = [1, 1]} : vector<8x128xf32> to vector<1x128xf32>
    %cst_71 = arith.constant dense<0.000000e+00> : vector<16xf32>
    %210 = vector.multi_reduction <add>, %207, %cst_71 [1] : vector<16x128xf32> to vector<16xf32>
    %211 = vector.shape_cast %210 : vector<16xf32> to vector<16x1xf32>
    %cst_72 = arith.constant 3.125000e-02 : f32
    %212 = vector.broadcast %cst_72 : f32 to vector<16x1xf32>
    %213 = arith.mulf %211, %212 : vector<16x1xf32>
    %214 = arith.mulf %207, %207 : vector<16x128xf32>
    %cst_73 = arith.constant dense<0.000000e+00> : vector<16xf32>
    %215 = vector.multi_reduction <add>, %214, %cst_73 [1] : vector<16x128xf32> to vector<16xf32>
    %216 = vector.shape_cast %215 : vector<16xf32> to vector<16x1xf32>
    %cst_74 = arith.constant 3.125000e-02 : f32
    %217 = vector.broadcast %cst_74 : f32 to vector<16x1xf32>
    %218 = arith.mulf %216, %217 : vector<16x1xf32>
    %219 = arith.mulf %213, %213 : vector<16x1xf32>
    %220 = arith.subf %218, %219 : vector<16x1xf32>
    %221 = vector.broadcast %213 : vector<16x1xf32> to vector<16x128xf32>
    %222 = arith.subf %207, %221 : vector<16x128xf32>
    %cst_75 = arith.constant 9.99999996E-13 : f32
    %223 = vector.broadcast %cst_75 : f32 to vector<16x1xf32>
    %224 = arith.addf %220, %223 : vector<16x1xf32>
    %225 = math.rsqrt %224 : vector<16x1xf32>
    %226 = vector.broadcast %225 : vector<16x1xf32> to vector<16x128xf32>
    %227 = arith.mulf %222, %226 : vector<16x128xf32>
    %228 = vector.broadcast %208 : vector<1x128xf32> to vector<16x128xf32>
    %229 = arith.mulf %227, %228 : vector<16x128xf32>
    %230 = vector.broadcast %209 : vector<1x128xf32> to vector<16x128xf32>
    %231 = arith.addf %229, %230 : vector<16x128xf32>
    %c1_76 = arith.constant 1 : index
    %c0_77 = arith.constant 0 : index
    %c0_78 = arith.constant 0 : index
    %232 = vector.load %arg10[%c1_76, %c0_77, %c0_78] : memref<2x8x128xf32, #tpu.memory_space<vmem>>, vector<1x8x128xf32>
    %233 = vector.shape_cast %232 : vector<1x8x128xf32> to vector<8x128xf32>
    %234 = arith.truncf %231 : vector<16x128xf32> to vector<16x128xbf16>
    %c1_79 = arith.constant 1 : index
    %c0_80 = arith.constant 0 : index
    %c0_81 = arith.constant 0 : index
    %235 = vector.load %arg5[%c1_79, %c0_80, %c0_81] : memref<2x128x128xbf16, #tpu.memory_space<vmem>>, vector<1x128x128xbf16>
    %236 = vector.shape_cast %235 : vector<1x128x128xbf16> to vector<128x128xbf16>
    %cst_82 = arith.constant dense<0.000000e+00> : vector<16x128xf32>
    %237 = tpu.matmul %234, %236, %cst_82 {dimension_numbers = #tpu.dot_dimension_numbers<[1], [0], [0], [1], [0, 0, 1, 1], [], []>} : vector<16x128xbf16>, vector<128x128xbf16>, vector<16x128xf32> -> vector<16x128xf32>
    %238 = vector.extract_strided_slice %233 {offsets = [0, 0], sizes = [1, 128], strides = [1, 1]} : vector<8x128xf32> to vector<1x128xf32>
    %239 = vector.broadcast %238 : vector<1x128xf32> to vector<16x128xf32>
    %240 = arith.addf %237, %239 : vector<16x128xf32>
    %241 = vector.extract_strided_slice %240 {offsets = [0, 0], sizes = [16, 8], strides = [1, 1]} : vector<16x128xf32> to vector<16x8xf32>
    %242 = arith.truncf %241 : vector<16x8xf32> to vector<16x8xbf16>
    %243 = vector.extract_strided_slice %240 {offsets = [0, 32], sizes = [16, 8], strides = [1, 1]} : vector<16x128xf32> to vector<16x8xf32>
    %244 = arith.truncf %243 : vector<16x8xf32> to vector<16x8xbf16>
    %245 = vector.extract_strided_slice %240 {offsets = [0, 64], sizes = [16, 8], strides = [1, 1]} : vector<16x128xf32> to vector<16x8xf32>
    %246 = arith.truncf %245 : vector<16x8xf32> to vector<16x8xbf16>
    %cst_83 = arith.constant dense<0.000000e+00> : vector<16x16xf32>
    %247 = tpu.matmul %242, %244, %cst_83 {dimension_numbers = #tpu.dot_dimension_numbers<[1], [1], [0], [0], [0, 0, 1, 0], [], []>} : vector<16x8xbf16>, vector<16x8xbf16>, vector<16x16xf32> -> vector<16x16xf32>
    %cst_84 = arith.constant 0.353553385 : f32
    %248 = vector.broadcast %cst_84 : f32 to vector<16x16xf32>
    %249 = arith.mulf %247, %248 : vector<16x16xf32>
    %250 = arith.addf %249, %53 : vector<16x16xf32>
    %cst_85 = arith.constant dense<0xFF800000> : vector<16xf32>
    %251 = vector.multi_reduction <maximumf>, %250, %cst_85 [1] : vector<16x16xf32> to vector<16xf32>
    %252 = vector.shape_cast %251 : vector<16xf32> to vector<16x1xf32>
    %253 = vector.broadcast %252 : vector<16x1xf32> to vector<16x16xf32>
    %254 = arith.subf %250, %253 : vector<16x16xf32>
    %255 = math.exp %254 : vector<16x16xf32>
    %cst_86 = arith.constant dense<0.000000e+00> : vector<16xf32>
    %256 = vector.multi_reduction <add>, %255, %cst_86 [1] : vector<16x16xf32> to vector<16xf32>
    %257 = vector.shape_cast %256 : vector<16xf32> to vector<16x1xf32>
    %258 = tpu.reciprocal %257 : vector<16x1xf32> -> vector<16x1xf32>
    %259 = vector.broadcast %258 : vector<16x1xf32> to vector<16x16xf32>
    %260 = arith.mulf %255, %259 : vector<16x16xf32>
    %261 = arith.truncf %260 : vector<16x16xf32> to vector<16x16xbf16>
    %cst_87 = arith.constant dense<0.000000e+00> : vector<16x8xf32>
    %262 = tpu.matmul %261, %246, %cst_87 {dimension_numbers = #tpu.dot_dimension_numbers<[1], [0], [0], [1], [0, 0, 1, 1], [], []>} : vector<16x16xbf16>, vector<16x8xbf16>, vector<16x8xf32> -> vector<16x8xf32>
    %263 = vector.extract_strided_slice %240 {offsets = [0, 8], sizes = [16, 8], strides = [1, 1]} : vector<16x128xf32> to vector<16x8xf32>
    %264 = arith.truncf %263 : vector<16x8xf32> to vector<16x8xbf16>
    %265 = vector.extract_strided_slice %240 {offsets = [0, 40], sizes = [16, 8], strides = [1, 1]} : vector<16x128xf32> to vector<16x8xf32>
    %266 = arith.truncf %265 : vector<16x8xf32> to vector<16x8xbf16>
    %267 = vector.extract_strided_slice %240 {offsets = [0, 72], sizes = [16, 8], strides = [1, 1]} : vector<16x128xf32> to vector<16x8xf32>
    %268 = arith.truncf %267 : vector<16x8xf32> to vector<16x8xbf16>
    %cst_88 = arith.constant dense<0.000000e+00> : vector<16x16xf32>
    %269 = tpu.matmul %264, %266, %cst_88 {dimension_numbers = #tpu.dot_dimension_numbers<[1], [1], [0], [0], [0, 0, 1, 0], [], []>} : vector<16x8xbf16>, vector<16x8xbf16>, vector<16x16xf32> -> vector<16x16xf32>
    %cst_89 = arith.constant 0.353553385 : f32
    %270 = vector.broadcast %cst_89 : f32 to vector<16x16xf32>
    %271 = arith.mulf %269, %270 : vector<16x16xf32>
    %272 = arith.addf %271, %53 : vector<16x16xf32>
    %cst_90 = arith.constant dense<0xFF800000> : vector<16xf32>
    %273 = vector.multi_reduction <maximumf>, %272, %cst_90 [1] : vector<16x16xf32> to vector<16xf32>
    %274 = vector.shape_cast %273 : vector<16xf32> to vector<16x1xf32>
    %275 = vector.broadcast %274 : vector<16x1xf32> to vector<16x16xf32>
    %276 = arith.subf %272, %275 : vector<16x16xf32>
    %277 = math.exp %276 : vector<16x16xf32>
    %cst_91 = arith.constant dense<0.000000e+00> : vector<16xf32>
    %278 = vector.multi_reduction <add>, %277, %cst_91 [1] : vector<16x16xf32> to vector<16xf32>
    %279 = vector.shape_cast %278 : vector<16xf32> to vector<16x1xf32>
    %280 = tpu.reciprocal %279 : vector<16x1xf32> -> vector<16x1xf32>
    %281 = vector.broadcast %280 : vector<16x1xf32> to vector<16x16xf32>
    %282 = arith.mulf %277, %281 : vector<16x16xf32>
    %283 = arith.truncf %282 : vector<16x16xf32> to vector<16x16xbf16>
    %cst_92 = arith.constant dense<0.000000e+00> : vector<16x8xf32>
    %284 = tpu.matmul %283, %268, %cst_92 {dimension_numbers = #tpu.dot_dimension_numbers<[1], [0], [0], [1], [0, 0, 1, 1], [], []>} : vector<16x16xbf16>, vector<16x8xbf16>, vector<16x8xf32> -> vector<16x8xf32>
    %285 = vector.extract_strided_slice %240 {offsets = [0, 16], sizes = [16, 8], strides = [1, 1]} : vector<16x128xf32> to vector<16x8xf32>
    %286 = arith.truncf %285 : vector<16x8xf32> to vector<16x8xbf16>
    %287 = vector.extract_strided_slice %240 {offsets = [0, 48], sizes = [16, 8], strides = [1, 1]} : vector<16x128xf32> to vector<16x8xf32>
    %288 = arith.truncf %287 : vector<16x8xf32> to vector<16x8xbf16>
    %289 = vector.extract_strided_slice %240 {offsets = [0, 80], sizes = [16, 8], strides = [1, 1]} : vector<16x128xf32> to vector<16x8xf32>
    %290 = arith.truncf %289 : vector<16x8xf32> to vector<16x8xbf16>
    %cst_93 = arith.constant dense<0.000000e+00> : vector<16x16xf32>
    %291 = tpu.matmul %286, %288, %cst_93 {dimension_numbers = #tpu.dot_dimension_numbers<[1], [1], [0], [0], [0, 0, 1, 0], [], []>} : vector<16x8xbf16>, vector<16x8xbf16>, vector<16x16xf32> -> vector<16x16xf32>
    %cst_94 = arith.constant 0.353553385 : f32
    %292 = vector.broadcast %cst_94 : f32 to vector<16x16xf32>
    %293 = arith.mulf %291, %292 : vector<16x16xf32>
    %294 = arith.addf %293, %53 : vector<16x16xf32>
    %cst_95 = arith.constant dense<0xFF800000> : vector<16xf32>
    %295 = vector.multi_reduction <maximumf>, %294, %cst_95 [1] : vector<16x16xf32> to vector<16xf32>
    %296 = vector.shape_cast %295 : vector<16xf32> to vector<16x1xf32>
    %297 = vector.broadcast %296 : vector<16x1xf32> to vector<16x16xf32>
    %298 = arith.subf %294, %297 : vector<16x16xf32>
    %299 = math.exp %298 : vector<16x16xf32>
    %cst_96 = arith.constant dense<0.000000e+00> : vector<16xf32>
    %300 = vector.multi_reduction <add>, %299, %cst_96 [1] : vector<16x16xf32> to vector<16xf32>
    %301 = vector.shape_cast %300 : vector<16xf32> to vector<16x1xf32>
    %302 = tpu.reciprocal %301 : vector<16x1xf32> -> vector<16x1xf32>
    %303 = vector.broadcast %302 : vector<16x1xf32> to vector<16x16xf32>
    %304 = arith.mulf %299, %303 : vector<16x16xf32>
    %305 = arith.truncf %304 : vector<16x16xf32> to vector<16x16xbf16>
    %cst_97 = arith.constant dense<0.000000e+00> : vector<16x8xf32>
    %306 = tpu.matmul %305, %290, %cst_97 {dimension_numbers = #tpu.dot_dimension_numbers<[1], [0], [0], [1], [0, 0, 1, 1], [], []>} : vector<16x16xbf16>, vector<16x8xbf16>, vector<16x8xf32> -> vector<16x8xf32>
    %307 = vector.extract_strided_slice %240 {offsets = [0, 24], sizes = [16, 8], strides = [1, 1]} : vector<16x128xf32> to vector<16x8xf32>
    %308 = arith.truncf %307 : vector<16x8xf32> to vector<16x8xbf16>
    %309 = vector.extract_strided_slice %240 {offsets = [0, 56], sizes = [16, 8], strides = [1, 1]} : vector<16x128xf32> to vector<16x8xf32>
    %310 = arith.truncf %309 : vector<16x8xf32> to vector<16x8xbf16>
    %311 = vector.extract_strided_slice %240 {offsets = [0, 88], sizes = [16, 8], strides = [1, 1]} : vector<16x128xf32> to vector<16x8xf32>
    %312 = arith.truncf %311 : vector<16x8xf32> to vector<16x8xbf16>
    %cst_98 = arith.constant dense<0.000000e+00> : vector<16x16xf32>
    %313 = tpu.matmul %308, %310, %cst_98 {dimension_numbers = #tpu.dot_dimension_numbers<[1], [1], [0], [0], [0, 0, 1, 0], [], []>} : vector<16x8xbf16>, vector<16x8xbf16>, vector<16x16xf32> -> vector<16x16xf32>
    %cst_99 = arith.constant 0.353553385 : f32
    %314 = vector.broadcast %cst_99 : f32 to vector<16x16xf32>
    %315 = arith.mulf %313, %314 : vector<16x16xf32>
    %316 = arith.addf %315, %53 : vector<16x16xf32>
    %cst_100 = arith.constant dense<0xFF800000> : vector<16xf32>
    %317 = vector.multi_reduction <maximumf>, %316, %cst_100 [1] : vector<16x16xf32> to vector<16xf32>
    %318 = vector.shape_cast %317 : vector<16xf32> to vector<16x1xf32>
    %319 = vector.broadcast %318 : vector<16x1xf32> to vector<16x16xf32>
    %320 = arith.subf %316, %319 : vector<16x16xf32>
    %321 = math.exp %320 : vector<16x16xf32>
    %cst_101 = arith.constant dense<0.000000e+00> : vector<16xf32>
    %322 = vector.multi_reduction <add>, %321, %cst_101 [1] : vector<16x16xf32> to vector<16xf32>
    %323 = vector.shape_cast %322 : vector<16xf32> to vector<16x1xf32>
    %324 = tpu.reciprocal %323 : vector<16x1xf32> -> vector<16x1xf32>
    %325 = vector.broadcast %324 : vector<16x1xf32> to vector<16x16xf32>
    %326 = arith.mulf %321, %325 : vector<16x16xf32>
    %327 = arith.truncf %326 : vector<16x16xf32> to vector<16x16xbf16>
    %cst_102 = arith.constant dense<0.000000e+00> : vector<16x8xf32>
    %328 = tpu.matmul %327, %312, %cst_102 {dimension_numbers = #tpu.dot_dimension_numbers<[1], [0], [0], [1], [0, 0, 1, 1], [], []>} : vector<16x16xbf16>, vector<16x8xbf16>, vector<16x8xf32> -> vector<16x8xf32>
    %329 = tpu.concatenate %262, %284, %306, %328, %54 in 1 : vector<16x8xf32>, vector<16x8xf32>, vector<16x8xf32>, vector<16x8xf32>, vector<16x96xf32> -> vector<16x128xf32>
    %330 = arith.truncf %329 : vector<16x128xf32> to vector<16x128xbf16>
    %c1_103 = arith.constant 1 : index
    %c0_104 = arith.constant 0 : index
    %c0_105 = arith.constant 0 : index
    %331 = vector.load %arg6[%c1_103, %c0_104, %c0_105] : memref<2x128x128xbf16, #tpu.memory_space<vmem>>, vector<1x128x128xbf16>
    %332 = vector.shape_cast %331 : vector<1x128x128xbf16> to vector<128x128xbf16>
    %cst_106 = arith.constant dense<0.000000e+00> : vector<16x128xf32>
    %333 = tpu.matmul %330, %332, %cst_106 {dimension_numbers = #tpu.dot_dimension_numbers<[1], [0], [0], [1], [0, 0, 1, 1], [], []>} : vector<16x128xbf16>, vector<128x128xbf16>, vector<16x128xf32> -> vector<16x128xf32>
    %334 = vector.extract_strided_slice %233 {offsets = [1, 0], sizes = [1, 128], strides = [1, 1]} : vector<8x128xf32> to vector<1x128xf32>
    %335 = vector.broadcast %334 : vector<1x128xf32> to vector<16x128xf32>
    %336 = arith.addf %333, %335 : vector<16x128xf32>
    %337 = arith.addf %336, %231 : vector<16x128xf32>
    %338 = vector.extract_strided_slice %233 {offsets = [2, 0], sizes = [1, 128], strides = [1, 1]} : vector<8x128xf32> to vector<1x128xf32>
    %339 = vector.extract_strided_slice %233 {offsets = [3, 0], sizes = [1, 128], strides = [1, 1]} : vector<8x128xf32> to vector<1x128xf32>
    %cst_107 = arith.constant dense<0.000000e+00> : vector<16xf32>
    %340 = vector.multi_reduction <add>, %337, %cst_107 [1] : vector<16x128xf32> to vector<16xf32>
    %341 = vector.shape_cast %340 : vector<16xf32> to vector<16x1xf32>
    %cst_108 = arith.constant 3.125000e-02 : f32
    %342 = vector.broadcast %cst_108 : f32 to vector<16x1xf32>
    %343 = arith.mulf %341, %342 : vector<16x1xf32>
    %344 = arith.mulf %337, %337 : vector<16x128xf32>
    %cst_109 = arith.constant dense<0.000000e+00> : vector<16xf32>
    %345 = vector.multi_reduction <add>, %344, %cst_109 [1] : vector<16x128xf32> to vector<16xf32>
    %346 = vector.shape_cast %345 : vector<16xf32> to vector<16x1xf32>
    %cst_110 = arith.constant 3.125000e-02 : f32
    %347 = vector.broadcast %cst_110 : f32 to vector<16x1xf32>
    %348 = arith.mulf %346, %347 : vector<16x1xf32>
    %349 = arith.mulf %343, %343 : vector<16x1xf32>
    %350 = arith.subf %348, %349 : vector<16x1xf32>
    %351 = vector.broadcast %343 : vector<16x1xf32> to vector<16x128xf32>
    %352 = arith.subf %337, %351 : vector<16x128xf32>
    %cst_111 = arith.constant 9.99999996E-13 : f32
    %353 = vector.broadcast %cst_111 : f32 to vector<16x1xf32>
    %354 = arith.addf %350, %353 : vector<16x1xf32>
    %355 = math.rsqrt %354 : vector<16x1xf32>
    %356 = vector.broadcast %355 : vector<16x1xf32> to vector<16x128xf32>
    %357 = arith.mulf %352, %356 : vector<16x128xf32>
    %358 = vector.broadcast %338 : vector<1x128xf32> to vector<16x128xf32>
    %359 = arith.mulf %357, %358 : vector<16x128xf32>
    %360 = vector.broadcast %339 : vector<1x128xf32> to vector<16x128xf32>
    %361 = arith.addf %359, %360 : vector<16x128xf32>
    %362 = arith.truncf %361 : vector<16x128xf32> to vector<16x128xbf16>
    %c1_112 = arith.constant 1 : index
    %c0_113 = arith.constant 0 : index
    %c0_114 = arith.constant 0 : index
    %363 = vector.load %arg7[%c1_112, %c0_113, %c0_114] : memref<2x128x128xbf16, #tpu.memory_space<vmem>>, vector<1x128x128xbf16>
    %364 = vector.shape_cast %363 : vector<1x128x128xbf16> to vector<128x128xbf16>
    %cst_115 = arith.constant dense<0.000000e+00> : vector<16x128xf32>
    %365 = tpu.matmul %362, %364, %cst_115 {dimension_numbers = #tpu.dot_dimension_numbers<[1], [0], [0], [1], [0, 0, 1, 1], [], []>} : vector<16x128xbf16>, vector<128x128xbf16>, vector<16x128xf32> -> vector<16x128xf32>
    %366 = vector.extract_strided_slice %233 {offsets = [4, 0], sizes = [1, 128], strides = [1, 1]} : vector<8x128xf32> to vector<1x128xf32>
    %367 = vector.broadcast %366 : vector<1x128xf32> to vector<16x128xf32>
    %368 = arith.addf %365, %367 : vector<16x128xf32>
    %cst_116 = arith.constant 5.000000e-01 : f32
    %369 = vector.broadcast %cst_116 : f32 to vector<16x128xf32>
    %370 = arith.mulf %369, %368 : vector<16x128xf32>
    %cst_117 = arith.constant 0.707106769 : f32
    %371 = vector.broadcast %cst_117 : f32 to vector<16x128xf32>
    %372 = arith.mulf %368, %371 : vector<16x128xf32>
    %373 = math.erf %372 : vector<16x128xf32>
    %cst_118 = arith.constant 1.000000e+00 : f32
    %374 = vector.broadcast %cst_118 : f32 to vector<16x128xf32>
    %375 = arith.addf %374, %373 : vector<16x128xf32>
    %376 = arith.mulf %370, %375 : vector<16x128xf32>
    %377 = arith.truncf %376 : vector<16x128xf32> to vector<16x128xbf16>
    %c1_119 = arith.constant 1 : index
    %c0_120 = arith.constant 0 : index
    %c0_121 = arith.constant 0 : index
    %378 = vector.load %arg8[%c1_119, %c0_120, %c0_121] : memref<2x128x128xbf16, #tpu.memory_space<vmem>>, vector<1x128x128xbf16>
    %379 = vector.shape_cast %378 : vector<1x128x128xbf16> to vector<128x128xbf16>
    %cst_122 = arith.constant dense<0.000000e+00> : vector<16x128xf32>
    %380 = tpu.matmul %377, %379, %cst_122 {dimension_numbers = #tpu.dot_dimension_numbers<[1], [0], [0], [1], [0, 0, 1, 1], [], []>} : vector<16x128xbf16>, vector<128x128xbf16>, vector<16x128xf32> -> vector<16x128xf32>
    %381 = vector.extract_strided_slice %233 {offsets = [5, 0], sizes = [1, 128], strides = [1, 1]} : vector<8x128xf32> to vector<1x128xf32>
    %382 = vector.broadcast %381 : vector<1x128xf32> to vector<16x128xf32>
    %383 = arith.addf %380, %382 : vector<16x128xf32>
    %384 = arith.addf %383, %361 : vector<16x128xf32>
    %385 = vector.extract_strided_slice %233 {offsets = [6, 0], sizes = [1, 128], strides = [1, 1]} : vector<8x128xf32> to vector<1x128xf32>
    %386 = vector.extract_strided_slice %233 {offsets = [7, 0], sizes = [1, 128], strides = [1, 1]} : vector<8x128xf32> to vector<1x128xf32>
    %cst_123 = arith.constant dense<0.000000e+00> : vector<16xf32>
    %387 = vector.multi_reduction <add>, %384, %cst_123 [1] : vector<16x128xf32> to vector<16xf32>
    %388 = vector.shape_cast %387 : vector<16xf32> to vector<16x1xf32>
    %cst_124 = arith.constant 3.125000e-02 : f32
    %389 = vector.broadcast %cst_124 : f32 to vector<16x1xf32>
    %390 = arith.mulf %388, %389 : vector<16x1xf32>
    %391 = arith.mulf %384, %384 : vector<16x128xf32>
    %cst_125 = arith.constant dense<0.000000e+00> : vector<16xf32>
    %392 = vector.multi_reduction <add>, %391, %cst_125 [1] : vector<16x128xf32> to vector<16xf32>
    %393 = vector.shape_cast %392 : vector<16xf32> to vector<16x1xf32>
    %cst_126 = arith.constant 3.125000e-02 : f32
    %394 = vector.broadcast %cst_126 : f32 to vector<16x1xf32>
    %395 = arith.mulf %393, %394 : vector<16x1xf32>
    %396 = arith.mulf %390, %390 : vector<16x1xf32>
    %397 = arith.subf %395, %396 : vector<16x1xf32>
    %398 = vector.broadcast %390 : vector<16x1xf32> to vector<16x128xf32>
    %399 = arith.subf %384, %398 : vector<16x128xf32>
    %cst_127 = arith.constant 9.99999996E-13 : f32
    %400 = vector.broadcast %cst_127 : f32 to vector<16x1xf32>
    %401 = arith.addf %397, %400 : vector<16x1xf32>
    %402 = math.rsqrt %401 : vector<16x1xf32>
    %403 = vector.broadcast %402 : vector<16x1xf32> to vector<16x128xf32>
    %404 = arith.mulf %399, %403 : vector<16x128xf32>
    %405 = vector.broadcast %385 : vector<1x128xf32> to vector<16x128xf32>
    %406 = arith.mulf %404, %405 : vector<16x128xf32>
    %407 = vector.broadcast %386 : vector<1x128xf32> to vector<16x128xf32>
    %408 = arith.addf %406, %407 : vector<16x128xf32>
    %409 = vector.extract_strided_slice %408 {offsets = [0, 0], sizes = [1, 128], strides = [1, 1]} : vector<16x128xf32> to vector<1x128xf32>
    %410 = vector.extract_strided_slice %408 {offsets = [8, 0], sizes = [1, 128], strides = [1, 1]} : vector<16x128xf32> to vector<1x128xf32>
    %411 = tpu.concatenate %409, %410 in 0 : vector<1x128xf32>, vector<1x128xf32> -> vector<2x128xf32>
    %412 = arith.truncf %411 : vector<2x128xf32> to vector<2x128xbf16>
    %c0_128 = arith.constant 0 : index
    %c0_129 = arith.constant 0 : index
    %413 = vector.load %arg9[%c0_128, %c0_129] : memref<128x128xbf16, #tpu.memory_space<vmem>>, vector<128x128xbf16>
    %cst_130 = arith.constant dense<0.000000e+00> : vector<2x128xf32>
    %414 = tpu.matmul %412, %413, %cst_130 {dimension_numbers = #tpu.dot_dimension_numbers<[1], [0], [0], [1], [0, 0, 1, 1], [], []>} : vector<2x128xbf16>, vector<128x128xbf16>, vector<2x128xf32> -> vector<2x128xf32>
    %c3 = arith.constant 3 : index
    %c0_131 = arith.constant 0 : index
    %415 = vector.load %arg11[%c3, %c0_131] : memref<8x128xf32, #tpu.memory_space<vmem>>, vector<1x128xf32>
    %416 = vector.broadcast %415 : vector<1x128xf32> to vector<2x128xf32>
    %417 = arith.addf %414, %416 : vector<2x128xf32>
    %418 = arith.mulf %417, %417 : vector<2x128xf32>
    %cst_132 = arith.constant dense<0.000000e+00> : vector<2xf32>
    %419 = vector.multi_reduction <add>, %418, %cst_132 [1] : vector<2x128xf32> to vector<2xf32>
    %420 = vector.shape_cast %419 : vector<2xf32> to vector<2x1xf32>
    %cst_133 = arith.constant 1.000000e-24 : f32
    %421 = vector.broadcast %cst_133 : f32 to vector<2x1xf32>
    %422 = arith.maximumf %420, %421 : vector<2x1xf32>
    %423 = math.rsqrt %422 : vector<2x1xf32>
    %424 = vector.broadcast %423 : vector<2x1xf32> to vector<2x128xf32>
    %425 = arith.mulf %417, %424 : vector<2x128xf32>
    %c0_134 = arith.constant 0 : index
    %c0_135 = arith.constant 0 : index
    %c0_136 = arith.constant 0 : index
    %426 = vector.load %arg12[%c0_134, %c0_135, %c0_136] : memref<1x2x128xf32, #tpu.memory_space<vmem>>, vector<1x2x128xf32>
    %427 = vector.shape_cast %426 : vector<1x2x128xf32> to vector<2x128xf32>
    %428 = vector.shape_cast %425 : vector<2x128xf32> to vector<1x2x128xf32>
    tpu.vector_store %arg12[%c0_134, %c0_135, %c0_136], %428 {strides = array<i32>} : memref<1x2x128xf32, #tpu.memory_space<vmem>>, vector<1x2x128xf32>,
    return
  }
  func.func @transform_0(%arg0: i32) -> (i32, i32, i32) {
    %c0_i32 = arith.constant 0 : i32
    %c0_i32_0 = arith.constant 0 : i32
    %c0_i32_1 = arith.constant 0 : i32
    return %arg0, %c0_i32, %c0_i32_0 : i32, i32, i32
  }
  func.func @transform_1(%arg0: i32) -> (i32, i32, i32) {
    %c0_i32 = arith.constant 0 : i32
    %c0_i32_0 = arith.constant 0 : i32
    %c0_i32_1 = arith.constant 0 : i32
    return %arg0, %c0_i32, %c0_i32_0 : i32, i32, i32
  }
  func.func @transform_2(%arg0: i32) -> (i32, i32) {
    %c0_i32 = arith.constant 0 : i32
    %c0_i32_0 = arith.constant 0 : i32
    %c0_i32_1 = arith.constant 0 : i32
    return %c0_i32, %c0_i32_0 : i32, i32
  }
  func.func @transform_3(%arg0: i32) -> (i32, i32) {
    %c0_i32 = arith.constant 0 : i32
    %c0_i32_0 = arith.constant 0 : i32
    %c0_i32_1 = arith.constant 0 : i32
    return %c0_i32, %c0_i32_0 : i32, i32
  }
  func.func @transform_4(%arg0: i32) -> (i32, i32, i32) {
    %c0_i32 = arith.constant 0 : i32
    %c0_i32_0 = arith.constant 0 : i32
    %c0_i32_1 = arith.constant 0 : i32
    %c0_i32_2 = arith.constant 0 : i32
    return %c0_i32, %c0_i32_0, %c0_i32_1 : i32, i32, i32
  }
  func.func @transform_5(%arg0: i32) -> (i32, i32, i32) {
    %c0_i32 = arith.constant 0 : i32
    %c0_i32_0 = arith.constant 0 : i32
    %c0_i32_1 = arith.constant 0 : i32
    %c0_i32_2 = arith.constant 0 : i32
    return %c0_i32, %c0_i32_0, %c0_i32_1 : i32, i32, i32
  }
  func.func @transform_6(%arg0: i32) -> (i32, i32, i32) {
    %c0_i32 = arith.constant 0 : i32
    %c0_i32_0 = arith.constant 0 : i32
    %c0_i32_1 = arith.constant 0 : i32
    %c0_i32_2 = arith.constant 0 : i32
    return %c0_i32, %c0_i32_0, %c0_i32_1 : i32, i32, i32
  }
  func.func @transform_7(%arg0: i32) -> (i32, i32, i32) {
    %c0_i32 = arith.constant 0 : i32
    %c0_i32_0 = arith.constant 0 : i32
    %c0_i32_1 = arith.constant 0 : i32
    %c0_i32_2 = arith.constant 0 : i32
    return %c0_i32, %c0_i32_0, %c0_i32_1 : i32, i32, i32
  }
  func.func @transform_8(%arg0: i32) -> (i32, i32) {
    %c0_i32 = arith.constant 0 : i32
    %c0_i32_0 = arith.constant 0 : i32
    %c0_i32_1 = arith.constant 0 : i32
    return %c0_i32, %c0_i32_0 : i32, i32
  }
  func.func @transform_9(%arg0: i32) -> (i32, i32, i32) {
    %c0_i32 = arith.constant 0 : i32
    %c0_i32_0 = arith.constant 0 : i32
    %c0_i32_1 = arith.constant 0 : i32
    %c0_i32_2 = arith.constant 0 : i32
    return %c0_i32, %c0_i32_0, %c0_i32_1 : i32, i32, i32
  }
  func.func @transform_10(%arg0: i32) -> (i32, i32) {
    %c0_i32 = arith.constant 0 : i32
    %c0_i32_0 = arith.constant 0 : i32
    %c0_i32_1 = arith.constant 0 : i32
    return %c0_i32, %c0_i32_0 : i32, i32
  }
  func.func @transform_11(%arg0: i32) -> (i32, i32, i32) {
    %c0_i32 = arith.constant 0 : i32
    %c0_i32_0 = arith.constant 0 : i32
    %c0_i32_1 = arith.constant 0 : i32
    return %arg0, %c0_i32, %c0_i32_0 : i32, i32, i32
  }
}

</mosaic_0001>

<bundles_post_ra>
// kernel: smiles_forward.1
= control target key start
LH: loop header
LB: loop body
LE: loop exit
PB: predicated region body
PF: predicated region fallthrough
CT: control target
= control target key end

     0   :  { %v3568_v2 = vmov 1   ;;  %v3569_v3 = vmov 0   ;;  %v3570_v6 = vmov 0.0   ;;  %vm3571_vm0 = vmmov 0   ;;  %s4366_s0 = inlined_call_operand.vmem [shape: s32[1,16,2], index: 0, kind: input, shape index: {}]   ;;  %s4367_s1 = inlined_call_operand.vmem [shape: f32[1,16,16], index: 1, kind: input, shape index: {}]   ;;  %s4368_s2 = inlined_call_operand.vmem [shape: bf16[256,128], index: 2, kind: input, shape index: {}]   ;;  %s4369_s3 = inlined_call_operand.vmem [shape: bf16[128,128], index: 3, kind: input, shape index: {}]   ;;  %s4370_s4 = inlined_call_operand.vmem [shape: bf16[2,128,128], index: 4, kind: input, shape index: {}]   ;;  %s4371_s5 = inlined_call_operand.vmem [shape: bf16[2,128,128], index: 5, kind: input, shape index: {}]   ;;  %s4372_s6 = inlined_call_operand.vmem [shape: bf16[2,128,128], index: 6, kind: input, shape index: {}]   ;;  %s4373_s7 = inlined_call_operand.vmem [shape: bf16[2,128,128], index: 7, kind: input, shape index: {}]   ;;  %s4374_s8 = inlined_call_operand.vmem [shape: bf16[128,128], index: 8, kind: input, shape index: {}]   ;;  %s4375_s9 = inlined_call_operand.vmem [shape: f32[2,8,128], index: 9, kind: input, shape index: {}]   ;;  %s4376_s10 = inlined_call_operand.vmem [shape: f32[8,128], index: 10, kind: input, shape index: {}]   ;;  %s4377_s11 = inlined_call_operand.hbm [shape: f32[1,2,128], index: 11, kind: output, shape index: {}]  }
   0x1   :  { %v40_v0 = vld [vmem:[%s4366_s0] sm:$0xff]  ;;  %v3354_v1 = vld [vmem:[%s4369_s3 + $0x38] sm:$0xff]   ;;  %3322 = vset.pattern.permute.xlu1 %v3568_v2  ;;  %3321 = vset.pattern.permute.xlu0 %v3569_v3  ;;  %v41_v4 = vld [vmem:[%s4366_s0 + $0x8] sm:$0xff] }
   0x2   :  { %62 = vperm.xlu1 %3322, %v40_v0   ;;  %46 = vperm.xlu0 %3321, %v40_v0   ;;  %v3355_v5 = vld [vmem:[%s4368_s2 + $0x78] sm:$0xff]   ;;  %v3357_v8 = vld [vmem:[%s4369_s3 + $0x30] sm:$0xff]   ;;  %v3360_v11 = vld [vmem:[%s4369_s3 + $0x28] sm:$0xff]  }
   0x3   :  { %3005 = vmatprep.subr.bf16.mxu0 %v3570_v6  ;;  %v3356_v7 = vld [vmem:[%s4368_s2 + $0x38] sm:$0xff]   ;;  %2870 = vmatprep.subr.bf16.mxu1 %v3355_v5  ;;  %v3358_v9 = vld [vmem:[%s4368_s2 + $0x70] sm:$0xff]   ;;  %v3361_v12 = vld [vmem:[%s4368_s2 + $0x68] sm:$0xff]  }
   0x4   :  { %3006 = vmatpush3.bf16.msra.mxu0 %v3354_v1  ;;  %2871 = vmatpush3.bf16.msra.mxu1 %v3356_v7  ;;  %v3359_v10 = vld [vmem:[%s4368_s2 + $0x30] sm:$0xff]   ;;  %v3362_v13 = vld [vmem:[%s4368_s2 + $0x28] sm:$0xff]   ;;  %v3364_v14 = vld [vmem:[%s4368_s2 + $0x60] sm:$0xff]  }
   0x5   :  { %3007 = vmatprep.subr.bf16.mxu0 %v3570_v6  ;;  %2872 = vmatprep.subr.bf16.mxu1 %v3358_v9  ;;  %v3363_v15 = vld [vmem:[%s4369_s3 + $0x20] sm:$0xff]   ;;  %v3367_v17 = vld [vmem:[%s4368_s2 + $0x58] sm:$0xff]   ;;  %v3370_v20 = vld [vmem:[%s4368_s2 + $0x50] sm:$0xff]  }
   0x6   :  { %65 = vperm.xlu1 %3322, %v41_v4   ;;  %49 = vperm.xlu0 %3321, %v41_v4   ;;  %v3365_v16 = vld [vmem:[%s4368_s2 + $0x20] sm:$0xff]   ;;  %v3366_v18 = vld [vmem:[%s4369_s3 + $0x18] sm:$0xff]   ;;  %v3369_v21 = vld [vmem:[%s4369_s3 + $0x10] sm:$0xff]  }
   0x7   :  { %3021 = vmatprep.mubr.msk.bf16.mxu0 %vm3571_vm0, %v3570_v6  ;;  %v3368_v19 = vld [vmem:[%s4368_s2 + $0x18] sm:$0xff]   ;;  %v3371_v22 = vld [vmem:[%s4368_s2 + $0x10] sm:$0xff]   ;;  %v3373_v23 = vld [vmem:[%s4368_s2 + $0x48] sm:$0xff]  }
   0x8   :  { %3008 = vmatpush3.bf16.msra.mxu0 %v3357_v8  ;;  %2873 = vmatpush3.bf16.msra.mxu1 %v3359_v10  ;;  %v3372_v24 = vld [vmem:[%s4369_s3 + $0x8] sm:$0xff]   ;;  %v3376_v26 = vld [vmem:[%s4368_s2 + $0x40] sm:$0xff]  }
   0x9   :  { %3009 = vmatprep.subr.bf16.mxu0 %v3570_v6  ;;  %2874 = vmatprep.subr.bf16.mxu1 %v3361_v12  ;;  %v3374_v25 = vld [vmem:[%s4368_s2 + $0x8] sm:$0xff]   ;;  %v3375_v27 = vld [vmem:[%s4369_s3] sm:$0xff]  }
   0xa   :  { %3353 = vset.pattern.permute.xlu0 %v3568_v2  ;;  %v3377_v28 = vld [vmem:[%s4368_s2] sm:$0xff]  }
   0xc   :  { %3010 = vmatpush3.bf16.msra.mxu0 %v3360_v11  ;;  %2875 = vmatpush3.bf16.msra.mxu1 %v3362_v13 }
   0xd   :  { %3011 = vmatprep.subr.bf16.mxu0 %v3570_v6  ;;  %2876 = vmatprep.subr.bf16.mxu1 %v3364_v14 }
  0x10   :  { %3012 = vmatpush3.bf16.msra.mxu0 %v3363_v15  ;;  %2877 = vmatpush3.bf16.msra.mxu1 %v3365_v16 }
  0x11   :  { %3013 = vmatprep.subr.bf16.mxu0 %v3570_v6  ;;  %2878 = vmatprep.subr.bf16.mxu1 %v3367_v17 }
  0x14   :  { %3014 = vmatpush3.bf16.msra.mxu0 %v3366_v18  ;;  %2879 = vmatpush3.bf16.msra.mxu1 %v3368_v19 }
  0x15   :  { %3015 = vmatprep.subr.bf16.mxu0 %v3570_v6  ;;  %2880 = vmatprep.subr.bf16.mxu1 %v3370_v20 }
  0x18   :  { %3016 = vmatpush3.bf16.msra.mxu0 %v3369_v21  ;;  %2881 = vmatpush3.bf16.msra.mxu1 %v3371_v22 }
  0x19   :  { %3017 = vmatprep.subr.bf16.mxu0 %v3570_v6  ;;  %2882 = vmatprep.subr.bf16.mxu1 %v3373_v23 }
  0x1c   :  { %3018 = vmatpush3.bf16.msra.mxu0 %v3372_v24  ;;  %2883 = vmatpush3.bf16.msra.mxu1 %v3374_v25 }
  0x1d   :  { %3019 = vmatprep.subr.bf16.mxu0 %v3570_v6  ;;  %2884 = vmatprep.subr.bf16.mxu1 %v3376_v26 }
  0x20   :  { %3020 = vmatpush3.bf16.msra.mxu0 %v3375_v27  ;;  %2885 = vmatpush3.bf16.msra.mxu1 %v3377_v28 }
  0x21   :  { %3025 = vmatprep.subr.bf16.mxu0 %v3570_v6  ;;  %3045 = vmatprep.subr.bf16.mxu1 %v3570_v6 }
  0x22   :  { %16 = vsyncpa [#allocation3], 0  ;;  %v42_v29 = vlaneseq  ;;  %v3572_v36 = vmov 1.0|1.0   ;;  %v2698_v45 = vld [vmem:[%s4376_s10 + $0x2] ss:$0 sm:$0xff] }
  0x23   :  { %v3378_v54 = vld [vmem:[%s4370_s4 + $0x38] sm:$0xff]   ;;  %v3379_v55 = vld [vmem:[%s4370_s4 + $0x30] sm:$0xff]   ;;  %v3380_v56 = vld [vmem:[%s4370_s4 + $0x28] sm:$0xff]   ;;  %s3573_s0 = smov 96   ;;  %s3574_s29 = smov 64   ;;  %vm510_vm10 = vcmask 64512  }
  0x24   :  { %v43_v30 = vand.u32 127, %v42_v29  ;;  %v3381_v57 = vld [vmem:[%s4370_s4 + $0x20] sm:$0xff]   ;;  %v3382_v58 = vld [vmem:[%s4370_s4 + $0x18] sm:$0xff]   ;;  %v3383_v59 = vld [vmem:[%s4370_s4 + $0x10] sm:$0xff]   ;;  %v3793_v26 = vshrl.u32 %v42_v29, 7  ;;  %s3575_s30 = smov 120  }
  0x25   :  { %v3384_v60 = vld [vmem:[%s4370_s4 + $0x8] sm:$0xff]   ;;  %v3385_v61 = vld [vmem:[%s4370_s4] sm:$0xff]   ;;  %s3576_s12 = smov 80   ;;  %s3577_s13 = smov 112   ;;  %vm562_vm11 = vcmask 130048   ;;  %vm1036_vm12 = vcmask 195584  }
  0x26   :  { %v44_v33 = vadd.s32 128, %v43_v30  ;;  %v2699_v16 = vld [vmem:[%s4376_s10] ss:$0 sm:$0xff]  ;;  %v2700_v21 = vld [vmem:[%s4376_s10 + $0x1] ss:$0 sm:$0xff]  ;;  %v415_v27 = vsub.s32 0, %v3793_v26 }
  0x27   :  { %v3799_v28 = vld [vmem:[%s4375_s9] sm:$0xff]  ;;  %s3578_s14 = smov 72   ;;  %s3579_s15 = smov 104   ;;  %vm1039_vm13 = vcmask 261120   ;;  %vm2533_vm15 = vcmask 1040384  }
  0x28   :  { %s3580_s20 = smov 88   ;;  %s3581_s21 = smov 56   ;;  %vm3949_vm14 = vmpackc.low %vm1039_vm13, %vm1039_vm13 }
  0x29   :  { %s3582_s22 = smov 40   ;;  %s3583_s23 = smov 48  }
  0x2a   :  { %s3584_s27 = smov 8   ;;  %s3585_s3 = smov 16  }
  0x2b   :  { %s3586_s16 = smov 24   ;;  %s3587_s19 = smov [#allocation2]  }
  0x2c   :  { %s2660_s24 = sshll.u32 %s3587_s19, 4  ;;  %s2661_s24 = int_to_ptr.vmem [resolvable:$true] %s2660_s24 }
  0x2d   :  { %s3546_s25 = scalar_lea.vmem %s2661_s24, 32  ;;  %p3551_p1 = scmp.lt.s32.totalorder %s2661_s24, %s2661_s24 }
  0x2e   :  { %p3547_p0 = scmp.ne.s32.totalorder %s2661_s24, %s3546_s25  ;;  %p3552_p2 = scmp.lt.s32.totalorder %s3546_s25, %s3546_s25 }
  0x30   :  { %p3553_p3 = por %p3552_p2, %p3551_p1 }
  0x32   :  { %p3554_p4 = pnand %p3553_p3, %p3547_p0 }
  0x7d   :  { %v63_v31 = vpop.permute.xlu1 %62  ;;  %v47_v32 = vpop.permute.xlu0 %46 }
  0x7e   :  { %vm67_vm1 = vcmp.eq.s32.totalorder %v63_v31, %v43_v30  ;;  %vm51_vm5 = vcmp.eq.s32.totalorder %v47_v32, %v43_v30  ;;  %vm52_vm8 = vcmp.eq.s32.totalorder %v47_v32, %v44_v33  ;;  %v416_v31 = vrot.slane %v3799_v28, %v415_v27 }
  0x81   :  { %v66_v34 = vpop.permute.xlu1 %65  ;;  %v50_v35 = vpop.permute.xlu0 %49 }
  0x82   :  { %vm68_vm2 = vcmp.eq.s32.totalorder %v66_v34, %v43_v30  ;;  %vm53_vm3 = vcmp.eq.s32.totalorder %v50_v35, %v43_v30  ;;  %vm54_vm4 = vcmp.eq.s32.totalorder %v50_v35, %v44_v33 }
  0x83   :  { %vm2676_vm6 = vmpackc.low %vm68_vm2, %vm67_vm1 }
  0x84   :  { %vm2696_vm7 = vmpackc.low %vm53_vm3, %vm51_vm5  ;;  %3022 = vmatmul.mubr.msk.bf16.vlgmr.msra.gmra.mxu0 %vm2676_vm6, %v3572_v36 }
  0x85   :  { %vm2694_vm9 = vmpackc.low %vm54_vm4, %vm52_vm8  ;;  %3041 = vmatprep.mubr.msk.bf16.mxu0 %vm3571_vm0, %v3570_v6  ;;  %3026 = vmatpush3.bf16.msra.mxu0 %v3378_v54 }
  0x86   :  { %2695 = vmatprep.mubr.msk.bf16.mxu1 %vm2694_vm9, %v3572_v36  ;;  %3027 = vmatprep.subr.bf16.mxu0 %v3570_v6 }
  0x87   :  { %2697 = vmatmul.mubr.msk.bf16.vlgmr.msra.gmra.mxu1 %vm2696_vm7, %v3572_v36 }
  0x88   :  { %3047 = vmatprep.mubr.msk.bf16.mxu1 %vm3571_vm0, %v3570_v6 }
  0x89   :  { %3028 = vmatpush3.bf16.msra.mxu0 %v3379_v55 }
  0x8a   :  { %3029 = vmatprep.subr.bf16.mxu0 %v3570_v6 }
  0x8d   :  { %3030 = vmatpush3.bf16.msra.mxu0 %v3380_v56 }
  0x8e   :  { %3031 = vmatprep.subr.bf16.mxu0 %v3570_v6 }
  0x91   :  { %3032 = vmatpush3.bf16.msra.mxu0 %v3381_v57 }
  0x92   :  { %3033 = vmatprep.subr.bf16.mxu0 %v3570_v6 }
  0x95   :  { %3034 = vmatpush3.bf16.msra.mxu0 %v3382_v58 }
  0x96   :  { %3035 = vmatprep.subr.bf16.mxu0 %v3570_v6 }
  0x99   :  { %3036 = vmatpush3.bf16.msra.mxu0 %v3383_v59 }
  0x9a   :  { %3037 = vmatprep.subr.bf16.mxu0 %v3570_v6 }
  0x9d   :  { %3038 = vmatpush3.bf16.msra.mxu0 %v3384_v60 }
  0x9e   :  { %3039 = vmatprep.subr.bf16.mxu0 %v3570_v6 }
  0xa1   :  { %3040 = vmatpush3.bf16.msra.mxu0 %v3385_v61 }
  0xa2   :  { %3069 = vmatprep.subr.bf16.mxu0 %v3570_v6 }
 0x144   :  { %v202_v37 = vpop.f32.mrf.mxu0 }
 0x146   :  { %v3023_v38 = vpop.f32.mrf.mxu0 }
 0x147   :  { %v2886_v39 = vpop.f32.mrf.mxu1 }
 0x148   :  { %v205_v40 = vpop.f32.mrf.mxu0 }
 0x149   :  { %v2887_v41 = vpop.f32.mrf.mxu1 }
 0x14a   :  { %v2888_v42 = vadd.f32 %v2887_v41, %v2886_v39  ;;  %v3024_v43 = vpop.f32.mrf.mxu0 }
 0x14b   :  { %v2889_v44 = vpop.f32.mrf.mxu1 }
 0x14c   :  { %v340_v46 = vadd.f32 %v2888_v42, %v202_v37 }
 0x14d   :  { %v2890_v47 = vpop.f32.mrf.mxu1 }
 0x14e   :  { %v2891_v48 = vadd.f32 %v2890_v47, %v2889_v44  ;;  %v351_v49 = vadd.f32 %v2698_v45, %v340_v46 }
 0x150   :  { %v343_v50 = vadd.f32 %v2891_v48, %v205_v40  ;;  %355 = vadd.xlane.f32.xlu0 %v351_v49  ;;  %v361_v52 = vmul.f32 %v351_v49, %v351_v49  ;;  %v3842_v48 = vld [vmem:[%s4367_s1] sm:$0xff] }
 0x152   :  { %v352_v51 = vadd.f32 %v2698_v45, %v343_v50 }
 0x154   :  { %357 = vadd.xlane.f32.xlu1 %v352_v51  ;;  %363 = vadd.xlane.f32.xlu0 %v361_v52  ;;  %v362_v53 = vmul.f32 %v352_v51, %v352_v51 }
 0x158   :  { %365 = vadd.xlane.f32.xlu0 %v362_v53  ;;  %v3848_v53 = vld [vmem:[%s4367_s1 + $0x8] sm:$0xff] }
 0x1d9   :  { %v356_v62 = vpop.xlane.xlu0 %355 }
 0x1da   :  { %v359_v63 = vmul.f32 0.03125, %v356_v62 }
 0x1dc   :  { %v369_v2 = vmul.f32 %v359_v63, %v359_v63  ;;  %v373_v13 = vsub.f32 %v351_v49, %v359_v63 }
 0x1dd   :  { %v358_v0 = vpop.xlane.xlu1 %357  ;;  %v364_v1 = vpop.xlane.xlu0 %363 }
 0x1de   :  { %v360_v3 = vmul.f32 0.03125, %v358_v0  ;;  %v367_v4 = vmul.f32 0.03125, %v364_v1 }
 0x1e0   :  { %v371_v5 = vsub.f32 %v367_v4, %v369_v2  ;;  %v370_v8 = vmul.f32 %v360_v3, %v360_v3  ;;  %v374_v17 = vsub.f32 %v352_v51, %v360_v3 }
 0x1e1   :  { %v366_v7 = vpop.xlane.xlu0 %365 }
 0x1e2   :  { %v375_v9 = vadd.f32 1e-12, %v371_v5  ;;  %v368_v10 = vmul.f32 0.03125, %v366_v7 }
 0x1e4   :  { %3450 = vrsqrt.f32 %v375_v9  ;;  %v372_v11 = vsub.f32 %v368_v10, %v370_v8 }
 0x1e6   :  { %v376_v12 = vadd.f32 1e-12, %v372_v11 }
 0x1e8   :  { %3452 = vrsqrt.f32 %v376_v12 }
 0x1f1   :  { %v3451_v14 = vpop.eup %3450 }
 0x1f2   :  { %v379_v15 = vmul.f32 %v3451_v14, %v373_v13 }
 0x1f4   :  { %v385_v20 = vmul.f32 %v2699_v16, %v379_v15 }
 0x1f5   :  { %v3453_v18 = vpop.eup %3452 }
 0x1f6   :  { %v380_v19 = vmul.f32 %v3453_v18, %v374_v17  ;;  %v3784_v23 = vadd.f32 %v2700_v21, %v385_v20 }
 0x1f8   :  { %v386_v22 = vmul.f32 %v2699_v16, %v380_v19 }
 0x1fa   :  { %v3786_v24 = vadd.f32 %v2700_v21, %v386_v22 }
 0x1fc   :  { %v396_v25 = vpack.c.bf16 %v3786_v24, %v3784_v23 }
 0x1fe   :  { %3042 = vmatmul.mubr.bf16.vlgmr.msra.gmra.mxu0 %v396_v25 }
 0x1ff   :  { %3071 = vmatprep.mubr.msk.bf16.mxu0 %vm3571_vm0, %v3570_v6 }
 0x2be   :  { %v499_v30 = vpop.f32.mrf.mxu0 }
 0x2bf   :  { %v500_v34 = vadd.f32 %v499_v30, %v416_v31 }
 0x2c0   :  { %v3043_v32 = vpop.f32.mrf.mxu0 }
 0x2c2   :  { %v502_v33 = vpop.f32.mrf.mxu0 }
 0x2c3   :  { %v503_v35 = vadd.f32 %v502_v33, %v416_v31 }
 0x2c4   :  { %v3044_v36 = vpop.f32.mrf.mxu0 }
 0x2c5   :  { %v3804_v37 = vpack.c.bf16 %v503_v35, %v500_v34 }
 0x2c7   :  { %508 = vrot.lane.b32.xlu1 %v3804_v37, %s3573_s0 }
 0x2cb   :  { %586 = vrot.lane.b32.xlu1 %v3804_v37, %s3574_s29 }
 0x2cf   :  { %633 = vrot.lane.b32.xlu1 %v3804_v37, %s3575_s30 }
 0x2d3   :  { %760 = vrot.lane.b32.xlu1 %v3804_v37, %s3576_s12 }
 0x2d7   :  { %758 = vrot.lane.b32.xlu1 %v3804_v37, %s3577_s13 }
 0x2db   :  { %885 = vrot.lane.b32.xlu1 %v3804_v37, %s3578_s14 }
 0x2df   :  { %883 = vrot.lane.b32.xlu1 %v3804_v37, %s3579_s15 }
 0x339   :  { %v509_v29 = vpop.permute.xlu1 %508 }
 0x33a   :  { %v515_v38 = vsel %vm510_vm10, %v509_v29, 0 }
 0x33b   :  { %3046 = vmatpush3.bf16.xpose.msra.mxu1 %v515_v38 }
 0x33c   :  { %3051 = vmatprep.subr.bf16.mxu1 %v3570_v6 }
 0x33d   :  { %v587_v39 = vpop.permute.xlu1 %586 }
 0x341   :  { %v3822_v40 = vpop.permute.xlu1 %633 }
 0x342   :  { %3048 = vmatmul.mubr.msk.bf16.vlgmr.msra.gmra.mxu1 %vm510_vm10, %v3804_v37 }
 0x343   :  { %3052 = vmatpush3.bf16.msra.mxu1 %v587_v39  ;;  %3053 = vmatprep.mubr.msk.bf16.mxu1 %vm3571_vm0, %v3570_v6 }
 0x344   :  { %3057 = vmatprep.subr.bf16.mxu1 %v3570_v6 }
 0x345   :  { %v761_v41 = vpop.permute.xlu1 %760 }
 0x346   :  { %v766_v42 = vsel %vm510_vm10, %v761_v41, 0 }
 0x347   :  { %3070 = vmatpush3.bf16.xpose.msra.mxu0 %v766_v42 }
 0x348   :  { %3081 = vmatprep.subr.bf16.mxu0 %v3570_v6 }
 0x349   :  { %v759_v43 = vpop.permute.xlu1 %758 }
 0x34d   :  { %v886_v44 = vpop.permute.xlu1 %885 }
 0x34e   :  { %v891_v45 = vsel %vm510_vm10, %v886_v44, 0  ;;  %3072 = vmatmul.mubr.msk.bf16.vlgmr.msra.gmra.mxu0 %vm510_vm10, %v759_v43 }
 0x34f   :  { %3082 = vmatpush3.bf16.xpose.msra.mxu0 %v891_v45  ;;  %3083 = vmatprep.mubr.msk.bf16.mxu0 %vm3571_vm0, %v3570_v6 }
 0x350   :  { %3093 = vmatprep.subr.bf16.mxu0 %v3570_v6 }
 0x351   :  { %v884_v46 = vpop.permute.xlu1 %883 }
 0x356   :  { %3084 = vmatmul.mubr.msk.bf16.vlgmr.msra.gmra.mxu0 %vm510_vm10, %v884_v46 }
 0x357   :  { %3109 = vmatprep.mubr.msk.bf16.mxu0 %vm3571_vm0, %v3570_v6 }
 0x402   :  { %v551_v47 = vpop.f32.mrf.mxu1 }
 0x403   :  { %v558_v49 = vmul.f32 0.35355338, %v551_v47 }
 0x404   :  { %v3049_v50 = vpop.f32.mrf.mxu1 }
 0x405   :  { %v560_v51 = vadd.f32 %v558_v49, %v3842_v48 }
 0x406   :  { %v554_v52 = vpop.f32.mrf.mxu1 }
 0x407   :  { %v559_v54 = vmul.f32 0.35355338, %v554_v52  ;;  %v563_v55 = vsel %vm562_vm11, %v560_v51, -inf }
 0x408   :  { %564 = vmax.xlane.f32.xlu0 %v563_v55  ;;  %v3050_v56 = vpop.f32.mrf.mxu1 }
 0x409   :  { %v561_v57 = vadd.f32 %v559_v54, %v3848_v53 }
 0x40b   :  { %v566_v58 = vsel %vm562_vm11, %v561_v57, -inf }
 0x40c   :  { %567 = vmax.xlane.f32.xlu0 %v566_v58 }
 0x40e   :  { %v802_v59 = vpop.f32.mrf.mxu0 }
 0x40f   :  { %v809_v33 = vmul.f32 0.35355338, %v802_v59 }
 0x410   :  { %v3073_v60 = vpop.f32.mrf.mxu0 }
 0x411   :  { %v811_v41 = vadd.f32 %v809_v33, %v3842_v48 }
 0x412   :  { %v805_v61 = vpop.f32.mrf.mxu0 }
 0x413   :  { %v810_v38 = vmul.f32 0.35355338, %v805_v61  ;;  %v813_v46 = vsel %vm562_vm11, %v811_v41, -inf }
 0x414   :  { %v3074_v62 = vpop.f32.mrf.mxu0 }
 0x415   :  { %v812_v50 = vadd.f32 %v810_v38, %v3848_v53 }
 0x416   :  { %v927_v63 = vpop.f32.mrf.mxu0 }
 0x417   :  { %v816_v52 = vsel %vm562_vm11, %v812_v50, -inf }
 0x418   :  { %v3085_v0 = vpop.f32.mrf.mxu0 }
 0x41a   :  { %v930_v1 = vpop.f32.mrf.mxu0 }
 0x41b   :  { %v935_v47 = vmul.f32 0.35355338, %v930_v1 }
 0x41c   :  { %v3086_v2 = vpop.f32.mrf.mxu0 }
 0x41d   :  { %v937_v55 = vadd.f32 %v935_v47, %v3848_v53 }
 0x41f   :  { %v941_v56 = vsel %vm562_vm11, %v937_v55, -inf }
 0x491   :  { %v565_v3 = vpop.xlane.xlu0 %564 }
 0x492   :  { %v569_v4 = vsub.f32 %v560_v51, %v565_v3 }
 0x494   :  { %v571_v5 = vmul.f32 1.442695, %v569_v4 }
 0x495   :  { %v568_v7 = vpop.xlane.xlu0 %567 }
 0x496   :  { %3454 = vpow2.f32 %v571_v5  ;;  %v570_v8 = vsub.f32 %v561_v57, %v568_v7 }
 0x498   :  { %v573_v9 = vmul.f32 1.442695, %v570_v8 }
 0x49a   :  { %3456 = vpow2.f32 %v573_v9 }
 0x4a3   :  { %v3455_v10 = vpop.eup %3454 }
 0x4a4   :  { %v575_v11 = vsel %vm562_vm11, %v3455_v10, 0.0 }
 0x4a5   :  { %576 = vadd.xlane.f32.xlu0 %v575_v11 }
 0x4a7   :  { %v3457_v12 = vpop.eup %3456 }
 0x4a8   :  { %v578_v13 = vsel %vm562_vm11, %v3457_v12, 0.0 }
 0x4a9   :  { %579 = vadd.xlane.f32.xlu0 %v578_v13 }
 0x4bf   :  { %635 = vrot.lane.b32.xlu0 %v3804_v37, %s3580_s20 }
 0x52e   :  { %v577_v14 = vpop.xlane.xlu0 %576 }
 0x52f   :  { %3458 = vrcp.f32 %v577_v14 }
 0x532   :  { %v580_v15 = vpop.xlane.xlu0 %579 }
 0x533   :  { %3460 = vrcp.f32 %v580_v15 }
 0x536   :  { %v636_v20 = vpop.permute.xlu0 %635 }
 0x537   :  { %v641_v22 = vsel %vm510_vm10, %v636_v20, 0 }
 0x53c   :  { %v3459_v16 = vpop.eup %3458 }
 0x53d   :  { %v583_v18 = vmul.f32 %v3459_v16, %v3455_v10 }
 0x540   :  { %v3461_v17 = vpop.eup %3460 }
 0x541   :  { %v584_v19 = vmul.f32 %v3461_v17, %v3457_v12 }
 0x543   :  { %v585_v21 = vpack.c.bf16 %v584_v19, %v583_v18 }
 0x545   :  { %3054 = vmatmul.mubr.msk.bf16.vlgmr.msra.gmra.mxu1 %vm562_vm11, %v585_v21 }
 0x546   :  { %3058 = vmatpush3.bf16.xpose.msra.mxu1 %v641_v22  ;;  %3059 = vmatprep.mubr.msk.bf16.mxu1 %vm3571_vm0, %v3570_v6 }
 0x547   :  { %3063 = vmatprep.subr.bf16.mxu1 %v3570_v6 }
 0x54d   :  { %3060 = vmatmul.mubr.msk.bf16.vlgmr.msra.gmra.mxu1 %vm510_vm10, %v3822_v40  ;;  %v934_v40 = vmul.f32 0.35355338, %v927_v63 }
 0x54e   :  { %3065 = vmatprep.mubr.msk.bf16.mxu1 %vm3571_vm0, %v3570_v6 }
 0x54f   :  { %v936_v51 = vadd.f32 %v934_v40, %v3842_v48 }
 0x551   :  { %v938_v54 = vsel %vm562_vm11, %v936_v51, -inf }
 0x605   :  { %v3866_v25 = vpop.f32.mrf.mxu1 }
 0x607   :  { %v3055_v30 = vpop.f32.mrf.mxu1 }
 0x609   :  { %v3868_v31 = vpop.f32.mrf.mxu1 }
 0x60b   :  { %v3056_v32 = vpop.f32.mrf.mxu1 }
 0x60d   :  { %v677_v34 = vpop.f32.mrf.mxu1 }
 0x60e   :  { %v684_v35 = vmul.f32 0.35355338, %v677_v34 }
 0x60f   :  { %v3061_v36 = vpop.f32.mrf.mxu1 }
 0x610   :  { %v686_v29 = vadd.f32 %v684_v35, %v3842_v48 }
 0x611   :  { %v680_v39 = vpop.f32.mrf.mxu1 }
 0x612   :  { %v685_v42 = vmul.f32 0.35355338, %v680_v39  ;;  %v688_v43 = vsel %vm562_vm11, %v686_v29, -inf }
 0x613   :  { %689 = vmax.xlane.f32.xlu0 %v688_v43  ;;  %v3062_v44 = vpop.f32.mrf.mxu1 }
 0x614   :  { %v687_v45 = vadd.f32 %v685_v42, %v3848_v53 }
 0x616   :  { %v691_v49 = vsel %vm562_vm11, %v687_v45, -inf }
 0x617   :  { %692 = vmax.xlane.f32.xlu1 %v691_v49  ;;  %814 = vmax.xlane.f32.xlu0 %v813_v46 }
 0x61b   :  { %817 = vmax.xlane.f32.xlu0 %v816_v52  ;;  %939 = vmax.xlane.f32.xlu1 %v938_v54 }
 0x61f   :  { %942 = vmax.xlane.f32.xlu0 %v941_v56 }
 0x69c   :  { %v690_v57 = vpop.xlane.xlu0 %689 }
 0x69d   :  { %v694_v63 = vsub.f32 %v686_v29, %v690_v57  ;;  %v3386_v57 = vld [vmem:[%s4371_s5 + $0x38] sm:$0xff]  }
 0x69e   :  { %3094 = vmatpush3.bf16.msra.mxu0 %v3386_v57  ;;  %v3400_v57 = vld [vmem:[%s4372_s6 + $0x8] sm:$0xff]  }
 0x69f   :  { %v696_v8 = vmul.f32 1.442695, %v694_v63  ;;  %3095 = vmatprep.subr.bf16.mxu0 %v3570_v6 }
 0x6a0   :  { %v693_v58 = vpop.xlane.xlu1 %692  ;;  %v815_v59 = vpop.xlane.xlu0 %814 }
 0x6a1   :  { %v819_v60 = vsub.f32 %v811_v41, %v815_v59  ;;  %v695_v61 = vsub.f32 %v687_v45, %v693_v58  ;;  %v3387_v58 = vld [vmem:[%s4371_s5 + $0x30] sm:$0xff]   ;;  %v3388_v59 = vld [vmem:[%s4371_s5 + $0x28] sm:$0xff]  }
 0x6a2   :  { %3096 = vmatpush3.bf16.msra.mxu0 %v3387_v58  ;;  %v3401_v58 = vld [vmem:[%s4372_s6] sm:$0xff]  }
 0x6a3   :  { %v821_v62 = vmul.f32 1.442695, %v819_v60  ;;  %v698_v4 = vmul.f32 1.442695, %v695_v61  ;;  %3097 = vmatprep.subr.bf16.mxu0 %v3570_v6  ;;  %v3389_v60 = vld [vmem:[%s4371_s5 + $0x20] sm:$0xff]   ;;  %v3390_v61 = vld [vmem:[%s4371_s5 + $0x18] sm:$0xff]  }
 0x6a4   :  { %v818_v0 = vpop.xlane.xlu0 %817  ;;  %v940_v1 = vpop.xlane.xlu1 %939 }
 0x6a5   :  { %v820_v2 = vsub.f32 %v812_v50, %v818_v0  ;;  %v944_v3 = vsub.f32 %v936_v51, %v940_v1  ;;  %3462 = vpow2.f32 %v821_v62  ;;  %v3391_v0 = vld [vmem:[%s4371_s5 + $0x10] sm:$0xff]  }
 0x6a6   :  { %3098 = vmatpush3.bf16.msra.mxu0 %v3388_v59  ;;  %v3402_v59 = vld [vmem:[%s4373_s7 + $0x38] sm:$0xff]  }
 0x6a7   :  { %v823_v5 = vmul.f32 1.442695, %v820_v2  ;;  %v946_v7 = vmul.f32 1.442695, %v944_v3  ;;  %3099 = vmatprep.subr.bf16.mxu0 %v3570_v6  ;;  %v3392_v3 = vld [vmem:[%s4371_s5 + $0x8] sm:$0xff]  }
 0x6a8   :  { %v943_v9 = vpop.xlane.xlu0 %942 }
 0x6a9   :  { %3464 = vpow2.f32 %v823_v5  ;;  %v945_v10 = vsub.f32 %v937_v55, %v943_v9 }
 0x6aa   :  { %3466 = vpow2.f32 %v946_v7  ;;  %3100 = vmatpush3.bf16.msra.mxu0 %v3389_v60 }
 0x6ab   :  { %3468 = vpow2.f32 %v698_v4  ;;  %v948_v11 = vmul.f32 1.442695, %v945_v10  ;;  %3101 = vmatprep.subr.bf16.mxu0 %v3570_v6 }
 0x6ac   :  { %3470 = vpow2.f32 %v696_v8  ;;  %v3393_v8 = vld [vmem:[%s4371_s5] sm:$0xff]  }
 0x6ad   :  { %3472 = vpow2.f32 %v948_v11 }
 0x6ae   :  { %3102 = vmatpush3.bf16.msra.mxu0 %v3390_v61 }
 0x6af   :  { %3103 = vmatprep.subr.bf16.mxu0 %v3570_v6 }
 0x6b2   :  { %v3463_v12 = vpop.eup %3462  ;;  %3104 = vmatpush3.bf16.msra.mxu0 %v3391_v0 }
 0x6b3   :  { %v825_v13 = vsel %vm562_vm11, %v3463_v12, 0.0  ;;  %3105 = vmatprep.subr.bf16.mxu0 %v3570_v6 }
 0x6b4   :  { %826 = vadd.xlane.f32.xlu1 %v825_v13 }
 0x6b6   :  { %v3465_v14 = vpop.eup %3464  ;;  %3106 = vmatpush3.bf16.msra.mxu0 %v3392_v3 }
 0x6b7   :  { %v3467_v15 = vpop.eup %3466  ;;  %v828_v16 = vsel %vm562_vm11, %v3465_v14, 0.0  ;;  %3107 = vmatprep.subr.bf16.mxu0 %v3570_v6 }
 0x6b8   :  { %v3469_v17 = vpop.eup %3468  ;;  %v950_v18 = vsel %vm562_vm11, %v3467_v15, 0.0  ;;  %829 = vadd.xlane.f32.xlu0 %v828_v16 }
 0x6b9   :  { %v3471_v19 = vpop.eup %3470  ;;  %951 = vadd.xlane.f32.xlu1 %v950_v18  ;;  %v703_v20 = vsel %vm562_vm11, %v3469_v17, 0.0 }
 0x6ba   :  { %v3473_v21 = vpop.eup %3472  ;;  %v700_v22 = vsel %vm562_vm11, %v3471_v19, 0.0  ;;  %3108 = vmatpush3.bf16.msra.mxu0 %v3393_v8 }
 0x6bb   :  { %v953_v30 = vsel %vm562_vm11, %v3473_v21, 0.0  ;;  %3133 = vmatprep.subr.bf16.mxu0 %v3570_v6 }
 0x6bc   :  { %704 = vadd.xlane.f32.xlu0 %v703_v20 }
 0x6bd   :  { %701 = vadd.xlane.f32.xlu1 %v700_v22 }
 0x6c0   :  { %954 = vadd.xlane.f32.xlu0 %v953_v30 }
 0x6ce   :  { %711 = vrot.lane.b32.xlu1 %v3804_v37, %s3581_s21 }
 0x6d2   :  { %961 = vrot.lane.b32.xlu1 %v3804_v37, %s3582_s22 }
 0x6d6   :  { %836 = vrot.lane.b32.xlu0 %v3804_v37, %s3583_s23 }
 0x73d   :  { %v827_v32 = vpop.xlane.xlu1 %826 }
 0x741   :  { %v830_v33 = vpop.xlane.xlu0 %829 }
 0x742   :  { %v952_v34 = vpop.xlane.xlu1 %951 }
 0x745   :  { %v705_v35 = vpop.xlane.xlu0 %704 }
 0x746   :  { %v702_v36 = vpop.xlane.xlu1 %701  ;;  %3474 = vrcp.f32 %v705_v35 }
 0x747   :  { %3476 = vrcp.f32 %v702_v36 }
 0x748   :  { %3478 = vrcp.f32 %v830_v33 }
 0x749   :  { %3480 = vrcp.f32 %v827_v32  ;;  %v955_v38 = vpop.xlane.xlu0 %954 }
 0x74a   :  { %v712_v29 = vpop.permute.xlu1 %711  ;;  %3482 = vrcp.f32 %v955_v38 }
 0x74b   :  { %3064 = vmatpush3.bf16.msra.mxu1 %v712_v29  ;;  %3484 = vrcp.f32 %v952_v34 }
 0x74c   :  { %3075 = vmatprep.subr.bf16.mxu1 %v3570_v6 }
 0x74d   :  { %v837_v44 = vpop.permute.xlu0 %836 }
 0x74e   :  { %v962_v51 = vpop.permute.xlu1 %961 }
 0x753   :  { %v3475_v39 = vpop.eup %3474 }
 0x754   :  { %v3477_v41 = vpop.eup %3476  ;;  %v709_v40 = vmul.f32 %v3475_v39, %v3469_v17 }
 0x755   :  { %v708_v37 = vmul.f32 %v3477_v41, %v3471_v19  ;;  %v3479_v43 = vpop.eup %3478 }
 0x756   :  { %v3481_v45 = vpop.eup %3480  ;;  %v834_v46 = vmul.f32 %v3479_v43, %v3465_v14 }
 0x757   :  { %v710_v42 = vpack.c.bf16 %v709_v40, %v708_v37  ;;  %v833_v47 = vmul.f32 %v3481_v45, %v3463_v12  ;;  %v3483_v50 = vpop.eup %3482 }
 0x758   :  { %v3485_v52 = vpop.eup %3484  ;;  %v959_v54 = vmul.f32 %v3483_v50, %v3473_v21 }
 0x759   :  { %3066 = vmatmul.mubr.msk.bf16.vlgmr.msra.gmra.mxu1 %vm562_vm11, %v710_v42  ;;  %v835_v49 = vpack.c.bf16 %v834_v46, %v833_v47  ;;  %v958_v55 = vmul.f32 %v3485_v52, %v3467_v15  ;;  %v3394_v52 = vld [vmem:[%s4372_s6 + $0x38] sm:$0xff]  }
 0x75a   :  { %3076 = vmatpush3.bf16.msra.mxu1 %v837_v44  ;;  %3077 = vmatprep.mubr.msk.bf16.mxu1 %vm3571_vm0, %v3570_v6 }
 0x75b   :  { %3087 = vmatprep.subr.bf16.mxu1 %v3570_v6  ;;  %v960_v56 = vpack.c.bf16 %v959_v54, %v958_v55  ;;  %v3397_v54 = vld [vmem:[%s4372_s6 + $0x20] sm:$0xff]   ;;  %v3398_v55 = vld [vmem:[%s4372_s6 + $0x18] sm:$0xff]  }
 0x761   :  { %3078 = vmatmul.mubr.msk.bf16.vlgmr.msra.gmra.mxu1 %vm562_vm11, %v835_v49 }
 0x762   :  { %3088 = vmatpush3.bf16.msra.mxu1 %v962_v51  ;;  %3089 = vmatprep.mubr.msk.bf16.mxu1 %vm3571_vm0, %v3570_v6 }
 0x763   :  { %3113 = vmatprep.subr.bf16.mxu1 %v3570_v6 }
 0x769   :  { %3090 = vmatmul.mubr.msk.bf16.vlgmr.msra.gmra.mxu1 %vm562_vm11, %v960_v56  ;;  %v3399_v56 = vld [vmem:[%s4372_s6 + $0x10] sm:$0xff]  }
 0x76a   :  { %3129 = vmatprep.mubr.msk.bf16.mxu1 %vm3571_vm0, %v3570_v6  ;;  %3114 = vmatpush3.bf16.msra.mxu1 %v3394_v52 }
 0x76b   :  { %3115 = vmatprep.subr.bf16.mxu1 %v3570_v6 }
 0x819   :  { %v751_v62 = vpop.f32.mrf.mxu1 }
 0x81b   :  { %v3067_v63 = vpop.f32.mrf.mxu1 }
 0x81d   :  { %v754_v1 = vpop.f32.mrf.mxu1 }
 0x81e   :  { %v3323_v2 = vpack.i.bf16 %v754_v1, %v751_v62 }
 0x81f   :  { %v3068_v4 = vpop.f32.mrf.mxu1 }
 0x820   :  { %3324 = vrot.lane.b32.xlu1 %v3323_v2, %s3584_s27 }
 0x821   :  { %v876_v5 = vpop.f32.mrf.mxu1 }
 0x823   :  { %v3079_v7 = vpop.f32.mrf.mxu1 }
 0x825   :  { %v879_v9 = vpop.f32.mrf.mxu1 }
 0x826   :  { %v3328_v10 = vpack.i.bf16 %v879_v9, %v876_v5 }
 0x827   :  { %v3080_v11 = vpop.f32.mrf.mxu1 }
 0x828   :  { %3329 = vrot.lane.b32.xlu0 %v3328_v10, %s3585_s3  ;;  %v1182_v11 = vsub.s32 2, %v3793_v26 }
 0x829   :  { %v1001_v12 = vpop.f32.mrf.mxu1 }
 0x82b   :  { %v3091_v13 = vpop.f32.mrf.mxu1 }
 0x82d   :  { %v1004_v14 = vpop.f32.mrf.mxu1 }
 0x82e   :  { %v3333_v15 = vpack.i.bf16 %v1004_v14, %v1001_v12 }
 0x82f   :  { %v3092_v16 = vpop.f32.mrf.mxu1 }
 0x830   :  { %3334 = vrot.lane.b32.xlu1 %v3333_v15, %s3586_s16  ;;  %v1183_v15 = vrot.slane %v3799_v28, %v1182_v11  ;;  %v1188_v16 = vsub.s32 3, %v3793_v26 }
 0x892   :  { %v3325_v17 = vpop.permute.xlu1 %3324 }
 0x893   :  { %v3327_v19 = vunpack.i.h.bf16 %v3325_v17  ;;  %v3326_v20 = vunpack.i.l.bf16 %v3325_v17 }
 0x895   :  { %v1033_v32 = vsel %vm510_vm10, %v3868_v31, %v3327_v19  ;;  %v1032_v33 = vsel %vm510_vm10, %v3866_v25, %v3326_v20  ;;  %v1061_v25 = vsub.s32 1, %v3793_v26 }
 0x897   :  { %v1062_v31 = vrot.slane %v3799_v28, %v1061_v25 }
 0x89a   :  { %v3330_v18 = vpop.permute.xlu0 %3329 }
 0x89b   :  { %v3332_v21 = vunpack.i.h.bf16 %v3330_v18  ;;  %v3331_v22 = vunpack.i.l.bf16 %v3330_v18 }
 0x89d   :  { %v1035_v36 = vsel %vm562_vm11, %v1033_v32, %v3332_v21  ;;  %v1034_v29 = vsel %vm562_vm11, %v1032_v33, %v3331_v22  ;;  %v1189_v21 = vrot.slane %v3799_v28, %v1188_v16 }
 0x8a2   :  { %v3335_v30 = vpop.permute.xlu1 %3334 }
 0x8a3   :  { %v3337_v34 = vunpack.i.h.bf16 %v3335_v30  ;;  %v3336_v35 = vunpack.i.l.bf16 %v3335_v30 }
 0x8a5   :  { %v1038_v38 = vsel %vm1036_vm12, %v1035_v36, %v3337_v34  ;;  %v1037_v39 = vsel %vm1036_vm12, %v1034_v29, %v3336_v35  ;;  %v3403_v34 = vld [vmem:[%s4373_s7 + $0x30] sm:$0xff]   ;;  %v3404_v35 = vld [vmem:[%s4373_s7 + $0x28] sm:$0xff]   ;;  %v3405_v36 = vld [vmem:[%s4373_s7 + $0x20] sm:$0xff]  }
 0x8a6   :  { %v2726_v40 = vpack.c.bf16 %v1038_v38, %v1037_v39  ;;  %v3406_v29 = vld [vmem:[%s4373_s7 + $0x18] sm:$0xff]   ;;  %v3407_v38 = vld [vmem:[%s4373_s7 + $0x10] sm:$0xff]   ;;  %v3408_v39 = vld [vmem:[%s4373_s7 + $0x8] sm:$0xff]  }
 0x8a8   :  { %3110 = vmatmul.mubr.msk.bf16.vlgmr.msra.gmra.mxu0 %vm3949_vm14, %v2726_v40  ;;  %v3409_v40 = vld [vmem:[%s4373_s7] sm:$0xff]  }
 0x8a9   :  { %3149 = vmatprep.mubr.msk.bf16.mxu0 %vm3571_vm0, %v3570_v6  ;;  %3134 = vmatpush3.bf16.msra.mxu0 %v3402_v59  ;;  %v1331_v59 = vsub.s32 5, %v3793_v26 }
 0x8aa   :  { %3135 = vmatprep.subr.bf16.mxu0 %v3570_v6 }
 0x8ad   :  { %3136 = vmatpush3.bf16.msra.mxu0 %v3403_v34 }
 0x8ae   :  { %3137 = vmatprep.subr.bf16.mxu0 %v3570_v6 }
 0x8b1   :  { %3138 = vmatpush3.bf16.msra.mxu0 %v3404_v35 }
 0x8b2   :  { %3139 = vmatprep.subr.bf16.mxu0 %v3570_v6 }
 0x8b5   :  { %3140 = vmatpush3.bf16.msra.mxu0 %v3405_v36 }
 0x8b6   :  { %3141 = vmatprep.subr.bf16.mxu0 %v3570_v6 }
 0x8b9   :  { %3142 = vmatpush3.bf16.msra.mxu0 %v3406_v29 }
 0x8ba   :  { %3143 = vmatprep.subr.bf16.mxu0 %v3570_v6 }
 0x8bd   :  { %3144 = vmatpush3.bf16.msra.mxu0 %v3407_v38 }
 0x8be   :  { %3145 = vmatprep.subr.bf16.mxu0 %v3570_v6 }
 0x8c1   :  { %3146 = vmatpush3.bf16.msra.mxu0 %v3408_v39 }
 0x8c2   :  { %3147 = vmatprep.subr.bf16.mxu0 %v3570_v6 }
 0x8c5   :  { %3148 = vmatpush3.bf16.msra.mxu0 %v3409_v40  ;;  %v1452_v40 = vsub.s32 6, %v3793_v26 }
 0x8c6   :  { %3173 = vmatprep.subr.bf16.mxu0 %v3570_v6 }
 0x968   :  { %v1145_v37 = vpop.f32.mrf.mxu0 }
 0x969   :  { %v1146_v42 = vadd.f32 %v1145_v37, %v1062_v31 }
 0x96a   :  { %v3111_v43 = vpop.f32.mrf.mxu0 }
 0x96b   :  { %v1152_v44 = vadd.f32 %v1146_v42, %v3784_v23  ;;  %v3395_v23 = vld [vmem:[%s4372_s6 + $0x30] sm:$0xff]  }
 0x96c   :  { %v1148_v45 = vpop.f32.mrf.mxu0  ;;  %3116 = vmatpush3.bf16.msra.mxu1 %v3395_v23 }
 0x96d   :  { %v1149_v46 = vadd.f32 %v1148_v45, %v1062_v31  ;;  %1154 = vadd.xlane.f32.xlu0 %v1152_v44  ;;  %v1160_v50 = vmul.f32 %v1152_v44, %v1152_v44  ;;  %3117 = vmatprep.subr.bf16.mxu1 %v3570_v6  ;;  %v1211_v31 = vsub.s32 4, %v3793_v26 }
 0x96e   :  { %v3112_v47 = vpop.f32.mrf.mxu0 }
 0x96f   :  { %v1153_v49 = vadd.f32 %v1149_v46, %v3786_v24  ;;  %v3396_v24 = vld [vmem:[%s4372_s6 + $0x28] sm:$0xff]   ;;  %v1212_v37 = vrot.slane %v3799_v28, %v1211_v31 }
 0x970   :  { %3118 = vmatpush3.bf16.msra.mxu1 %v3396_v24 }
 0x971   :  { %1162 = vadd.xlane.f32.xlu0 %v1160_v50  ;;  %1156 = vadd.xlane.f32.xlu1 %v1153_v49  ;;  %v1161_v51 = vmul.f32 %v1153_v49, %v1153_v49 }
 0x972   :  { %3119 = vmatprep.subr.bf16.mxu1 %v3570_v6 }
 0x974   :  { %3120 = vmatpush3.bf16.msra.mxu1 %v3397_v54 }
 0x975   :  { %1164 = vadd.xlane.f32.xlu0 %v1161_v51  ;;  %3121 = vmatprep.subr.bf16.mxu1 %v3570_v6 }
 0x978   :  { %3122 = vmatpush3.bf16.msra.mxu1 %v3398_v55 }
 0x979   :  { %3123 = vmatprep.subr.bf16.mxu1 %v3570_v6 }
 0x97c   :  { %3124 = vmatpush3.bf16.msra.mxu1 %v3399_v56 }
 0x97d   :  { %3125 = vmatprep.subr.bf16.mxu1 %v3570_v6 }
 0x980   :  { %3126 = vmatpush3.bf16.msra.mxu1 %v3400_v57 }
 0x981   :  { %3127 = vmatprep.subr.bf16.mxu1 %v3570_v6 }
 0x984   :  { %3128 = vmatpush3.bf16.msra.mxu1 %v3401_v58 }
 0x985   :  { %3153 = vmatprep.subr.bf16.mxu1 %v3570_v6 }
 0x9f6   :  { %v1155_v60 = vpop.xlane.xlu0 %1154 }
 0x9f7   :  { %v1158_v61 = vmul.f32 0.03125, %v1155_v60  ;;  %v1332_v60 = vrot.slane %v3799_v28, %v1331_v59 }
 0x9f9   :  { %v1168_v0 = vmul.f32 %v1158_v61, %v1158_v61  ;;  %v1172_v12 = vsub.f32 %v1152_v44, %v1158_v61 }
 0x9fa   :  { %v1163_v62 = vpop.xlane.xlu0 %1162  ;;  %v1157_v63 = vpop.xlane.xlu1 %1156 }
 0x9fb   :  { %v1166_v1 = vmul.f32 0.03125, %v1163_v62  ;;  %v1159_v2 = vmul.f32 0.03125, %v1157_v63 }
 0x9fd   :  { %v1170_v3 = vsub.f32 %v1166_v1, %v1168_v0  ;;  %v1169_v7 = vmul.f32 %v1159_v2, %v1159_v2  ;;  %v1173_v17 = vsub.f32 %v1153_v49, %v1159_v2 }
 0x9fe   :  { %v1165_v4 = vpop.xlane.xlu0 %1164 }
 0x9ff   :  { %v1174_v5 = vadd.f32 1e-12, %v1170_v3  ;;  %v1167_v8 = vmul.f32 0.03125, %v1165_v4 }
 0xa01   :  { %3486 = vrsqrt.f32 %v1174_v5  ;;  %v1171_v9 = vsub.f32 %v1167_v8, %v1169_v7  ;;  %v3410_v8 = vld [vmem:[%s4370_s4 + $0x78] sm:$0xff]  }
 0xa03   :  { %v1175_v10 = vadd.f32 1e-12, %v1171_v9  ;;  %v3411_v9 = vld [vmem:[%s4370_s4 + $0x70] sm:$0xff]  }
 0xa05   :  { %3488 = vrsqrt.f32 %v1175_v10  ;;  %v3412_v10 = vld [vmem:[%s4370_s4 + $0x68] sm:$0xff]  }
 0xa0e   :  { %v3487_v13 = vpop.eup %3486 }
 0xa0f   :  { %v1178_v14 = vmul.f32 %v3487_v13, %v1172_v12  ;;  %v3413_v12 = vld [vmem:[%s4370_s4 + $0x60] sm:$0xff]   ;;  %v3414_v13 = vld [vmem:[%s4370_s4 + $0x58] sm:$0xff]  }
 0xa11   :  { %v1184_v20 = vmul.f32 %v1183_v15, %v1178_v14  ;;  %v3415_v14 = vld [vmem:[%s4370_s4 + $0x50] sm:$0xff]  }
 0xa12   :  { %v3489_v18 = vpop.eup %3488 }
 0xa13   :  { %v1179_v19 = vmul.f32 %v3489_v18, %v1173_v17  ;;  %v1190_v30 = vadd.f32 %v1189_v21, %v1184_v20  ;;  %v3417_v17 = vld [vmem:[%s4370_s4 + $0x40] sm:$0xff]  }
 0xa15   :  { %v1185_v22 = vmul.f32 %v1183_v15, %v1179_v19  ;;  %v3416_v15 = vld [vmem:[%s4370_s4 + $0x48] sm:$0xff]  }
 0xa17   :  { %v1191_v32 = vadd.f32 %v1189_v21, %v1185_v22 }
 0xa19   :  { %v1192_v33 = vpack.c.bf16 %v1191_v32, %v1190_v30 }
 0xa1b   :  { %3130 = vmatmul.mubr.bf16.vlgmr.msra.gmra.mxu1 %v1192_v33 }
 0xa1c   :  { %3169 = vmatprep.mubr.msk.bf16.mxu1 %vm3571_vm0, %v3570_v6  ;;  %3154 = vmatpush3.bf16.msra.mxu1 %v3410_v8 }
 0xa1d   :  { %3155 = vmatprep.subr.bf16.mxu1 %v3570_v6 }
 0xa20   :  { %3156 = vmatpush3.bf16.msra.mxu1 %v3411_v9 }
 0xa21   :  { %3157 = vmatprep.subr.bf16.mxu1 %v3570_v6 }
 0xa24   :  { %3158 = vmatpush3.bf16.msra.mxu1 %v3412_v10 }
 0xa25   :  { %3159 = vmatprep.subr.bf16.mxu1 %v3570_v6 }
 0xa28   :  { %3160 = vmatpush3.bf16.msra.mxu1 %v3413_v12 }
 0xa29   :  { %3161 = vmatprep.subr.bf16.mxu1 %v3570_v6 }
 0xa2c   :  { %3162 = vmatpush3.bf16.msra.mxu1 %v3414_v13 }
 0xa2d   :  { %3163 = vmatprep.subr.bf16.mxu1 %v3570_v6 }
 0xa30   :  { %3164 = vmatpush3.bf16.msra.mxu1 %v3415_v14 }
 0xa31   :  { %3165 = vmatprep.subr.bf16.mxu1 %v3570_v6 }
 0xa34   :  { %3166 = vmatpush3.bf16.msra.mxu1 %v3416_v15 }
 0xa35   :  { %3167 = vmatprep.subr.bf16.mxu1 %v3570_v6 }
 0xa38   :  { %3168 = vmatpush3.bf16.msra.mxu1 %v3417_v17 }
 0xa39   :  { %3179 = vmatprep.subr.bf16.mxu1 %v3570_v6 }
 0xadb   :  { %v1295_v42 = vpop.f32.mrf.mxu1 }
 0xadc   :  { %v1296_v43 = vadd.f32 %v1295_v42, %v1212_v37 }
 0xadd   :  { %v3131_v44 = vpop.f32.mrf.mxu1 }
 0xade   :  { %v1304_v45 = vmul.f32 0.70710677, %v1296_v43  ;;  %v1302_v24 = vmul.f32 0.5, %v1296_v43  ;;  %v1453_v44 = vrot.slane %v3799_v28, %v1452_v40 }
 0xadf   :  { %v1298_v46 = vpop.f32.mrf.mxu1 }
 0xae0   :  { %3490 = verf.f32 %v1304_v45  ;;  %v1299_v47 = vadd.f32 %v1298_v46, %v1212_v37  ;;  %v1458_v45 = vsub.s32 7, %v3793_v26 }
 0xae1   :  { %v3132_v49 = vpop.f32.mrf.mxu1 }
 0xae2   :  { %v1305_v50 = vmul.f32 0.70710677, %v1299_v47  ;;  %v1303_v54 = vmul.f32 0.5, %v1299_v47 }
 0xae4   :  { %3492 = verf.f32 %v1305_v50 }
 0xaed   :  { %v3491_v51 = vpop.eup %3490 }
 0xaee   :  { %v1308_v52 = vadd.f32 1.0, %v3491_v51  ;;  %v1459_v51 = vrot.slane %v3799_v28, %v1458_v45 }
 0xaf0   :  { %v1310_v56 = vmul.f32 %v1308_v52, %v1302_v24 }
 0xaf1   :  { %v3493_v23 = vpop.eup %3492 }
 0xaf2   :  { %v1309_v55 = vadd.f32 1.0, %v3493_v23 }
 0xaf4   :  { %v1311_v57 = vmul.f32 %v1309_v55, %v1303_v54  ;;  %v4098_v55 = vld [vmem:[%s4375_s9 + $0x8] sm:$0xff] }
 0xaf5   :  { %v1485_v28 = vrot.slane %v4098_v55, %v415_v27 }
 0xaf6   :  { %v1312_v58 = vpack.c.bf16 %v1311_v57, %v1310_v56 }
 0xaf8   :  { %3150 = vmatmul.mubr.bf16.vlgmr.msra.gmra.mxu0 %v1312_v58 }
 0xaf9   :  { %3175 = vmatprep.mubr.msk.bf16.mxu0 %vm3571_vm0, %v3570_v6 }
 0xbb8   :  { %v1415_v61 = vpop.f32.mrf.mxu0 }
 0xbb9   :  { %v1416_v62 = vadd.f32 %v1415_v61, %v1332_v60 }
 0xbba   :  { %v3151_v63 = vpop.f32.mrf.mxu0 }
 0xbbb   :  { %v1422_v0 = vadd.f32 %v1416_v62, %v1190_v30 }
 0xbbc   :  { %v1418_v1 = vpop.f32.mrf.mxu0 }
 0xbbd   :  { %v1419_v2 = vadd.f32 %v1418_v1, %v1332_v60  ;;  %1424 = vadd.xlane.f32.xlu1 %v1422_v0  ;;  %v1430_v5 = vmul.f32 %v1422_v0, %v1422_v0 }
 0xbbe   :  { %v3152_v3 = vpop.f32.mrf.mxu0 }
 0xbbf   :  { %v1423_v4 = vadd.f32 %v1419_v2, %v1191_v32 }
 0xbc1   :  { %1432 = vadd.xlane.f32.xlu1 %v1430_v5  ;;  %1426 = vadd.xlane.f32.xlu0 %v1423_v4  ;;  %v1431_v7 = vmul.f32 %v1423_v4, %v1423_v4 }
 0xbc5   :  { %1434 = vadd.xlane.f32.xlu0 %v1431_v7 }
 0xc46   :  { %v1425_v18 = vpop.xlane.xlu1 %1424 }
 0xc47   :  { %v1428_v19 = vmul.f32 0.03125, %v1425_v18 }
 0xc49   :  { %v1438_v22 = vmul.f32 %v1428_v19, %v1428_v19  ;;  %v1442_v37 = vsub.f32 %v1422_v0, %v1428_v19 }
 0xc4a   :  { %v1433_v20 = vpop.xlane.xlu1 %1432  ;;  %v1427_v21 = vpop.xlane.xlu0 %1426 }
 0xc4b   :  { %v1436_v30 = vmul.f32 0.03125, %v1433_v20  ;;  %v1429_v32 = vmul.f32 0.03125, %v1427_v21 }
 0xc4d   :  { %v1440_v33 = vsub.f32 %v1436_v30, %v1438_v22  ;;  %v1439_v36 = vmul.f32 %v1429_v32, %v1429_v32  ;;  %v1443_v46 = vsub.f32 %v1423_v4, %v1429_v32 }
 0xc4e   :  { %v1435_v34 = vpop.xlane.xlu0 %1434 }
 0xc4f   :  { %v1444_v35 = vadd.f32 1e-12, %v1440_v33  ;;  %v1437_v29 = vmul.f32 0.03125, %v1435_v34 }
 0xc51   :  { %3494 = vrsqrt.f32 %v1444_v35  ;;  %v1441_v38 = vsub.f32 %v1437_v29, %v1439_v36 }
 0xc53   :  { %v1445_v39 = vadd.f32 1e-12, %v1441_v38 }
 0xc55   :  { %3496 = vrsqrt.f32 %v1445_v39 }
 0xc5e   :  { %v3495_v42 = vpop.eup %3494 }
 0xc5f   :  { %v1448_v43 = vmul.f32 %v3495_v42, %v1442_v37 }
 0xc61   :  { %v1454_v50 = vmul.f32 %v1453_v44, %v1448_v43 }
 0xc62   :  { %v3497_v47 = vpop.eup %3496 }
 0xc63   :  { %v1449_v49 = vmul.f32 %v3497_v47, %v1443_v46  ;;  %v4087_v23 = vadd.f32 %v1459_v51, %v1454_v50 }
 0xc65   :  { %v1455_v52 = vmul.f32 %v1453_v44, %v1449_v49 }
 0xc67   :  { %v4089_v24 = vadd.f32 %v1459_v51, %v1455_v52 }
 0xc69   :  { %v1464_v54 = vpack.c.bf16 %v4089_v24, %v4087_v23 }
 0xc6b   :  { %3170 = vmatmul.mubr.bf16.vlgmr.msra.gmra.mxu1 %v1464_v54 }
 0xc6c   :  { %3181 = vmatprep.mubr.msk.bf16.mxu1 %vm3571_vm0, %v3570_v6 }
 0xd2b   :  { %v1568_v56 = vpop.f32.mrf.mxu1 }
 0xd2c   :  { %v1569_v60 = vadd.f32 %v1568_v56, %v1485_v28 }
 0xd2d   :  { %v3171_v57 = vpop.f32.mrf.mxu1 }
 0xd2f   :  { %v1571_v58 = vpop.f32.mrf.mxu1 }
 0xd30   :  { %v1572_v61 = vadd.f32 %v1571_v58, %v1485_v28  ;;  %v3544_v58 = vld [vmem:[%s4367_s1] sm:$0xff] }
 0xd31   :  { %v3172_v62 = vpop.f32.mrf.mxu1 }
 0xd32   :  { %v4103_v63 = vpack.c.bf16 %v1572_v61, %v1569_v60 }
 0xd34   :  { %1702 = vrot.lane.b32.xlu0 %v4103_v63, %s3580_s20  ;;  %1577 = vrot.lane.b32.xlu1 %v4103_v63, %s3573_s0 }
 0xd38   :  { %1825 = vrot.lane.b32.xlu0 %v4103_v63, %s3577_s13  ;;  %1700 = vrot.lane.b32.xlu1 %v4103_v63, %s3575_s30 }
 0xd3c   :  { %1950 = vrot.lane.b32.xlu0 %v4103_v63, %s3579_s15  ;;  %1827 = vrot.lane.b32.xlu1 %v4103_v63, %s3576_s12 }
 0xd40   :  { %1952 = vrot.lane.b32.xlu1 %v4103_v63, %s3578_s14 }
 0xda6   :  { %v1578_v27 = vpop.permute.xlu1 %1577  ;;  %v1703_v1 = vpop.permute.xlu0 %1702 }
 0xda7   :  { %v1583_v0 = vsel %vm510_vm10, %v1578_v27, 0  ;;  %v1708_v3 = vsel %vm510_vm10, %v1703_v1, 0 }
 0xda8   :  { %3174 = vmatpush3.bf16.xpose.msra.mxu0 %v1583_v0 }
 0xda9   :  { %3185 = vmatprep.subr.bf16.mxu0 %v3570_v6 }
 0xdaa   :  { %v1701_v2 = vpop.permute.xlu1 %1700  ;;  %v1826_v8 = vpop.permute.xlu0 %1825 }
 0xdae   :  { %v1828_v4 = vpop.permute.xlu1 %1827  ;;  %v1951_v10 = vpop.permute.xlu0 %1950 }
 0xdaf   :  { %3176 = vmatmul.mubr.msk.bf16.vlgmr.msra.gmra.mxu0 %vm510_vm10, %v4103_v63  ;;  %v1833_v5 = vsel %vm510_vm10, %v1828_v4, 0 }
 0xdb0   :  { %3186 = vmatpush3.bf16.xpose.msra.mxu0 %v1708_v3  ;;  %3187 = vmatprep.mubr.msk.bf16.mxu0 %vm3571_vm0, %v3570_v6 }
 0xdb1   :  { %3197 = vmatprep.subr.bf16.mxu0 %v3570_v6 }
 0xdb2   :  { %v1953_v7 = vpop.permute.xlu1 %1952 }
 0xdb3   :  { %v1958_v9 = vsel %vm510_vm10, %v1953_v7, 0 }
 0xdb7   :  { %3188 = vmatmul.mubr.msk.bf16.vlgmr.msra.gmra.mxu0 %vm510_vm10, %v1701_v2 }
 0xdb8   :  { %3198 = vmatpush3.bf16.xpose.msra.mxu0 %v1833_v5  ;;  %3199 = vmatprep.mubr.msk.bf16.mxu0 %vm3571_vm0, %v3570_v6 }
 0xdb9   :  { %3209 = vmatprep.subr.bf16.mxu0 %v3570_v6 }
 0xdbf   :  { %3200 = vmatmul.mubr.msk.bf16.vlgmr.msra.gmra.mxu0 %vm510_vm10, %v1826_v8 }
 0xdc0   :  { %3210 = vmatpush3.bf16.xpose.msra.mxu0 %v1958_v9  ;;  %3211 = vmatprep.mubr.msk.bf16.mxu0 %vm3571_vm0, %v3570_v6 }
 0xdc1   :  { %3221 = vmatprep.subr.bf16.mxu0 %v3570_v6 }
 0xdc7   :  { %3212 = vmatmul.mubr.msk.bf16.vlgmr.msra.gmra.mxu0 %vm510_vm10, %v1951_v10 }
 0xdc8   :  { %3237 = vmatprep.mubr.msk.bf16.mxu0 %vm3571_vm0, %v3570_v6 }
 0xe6f   :  { %v1619_v12 = vpop.f32.mrf.mxu0 }
 0xe70   :  { %v1626_v13 = vmul.f32 0.35355338, %v1619_v12 }
 0xe71   :  { %v3177_v14 = vpop.f32.mrf.mxu0 }
 0xe72   :  { %v1628_v15 = vadd.f32 %v1626_v13, %v3842_v48 }
 0xe73   :  { %v1622_v17 = vpop.f32.mrf.mxu0 }
 0xe74   :  { %v1627_v18 = vmul.f32 0.35355338, %v1622_v17  ;;  %v1630_v19 = vsel %vm562_vm11, %v1628_v15, -inf }
 0xe75   :  { %1631 = vmax.xlane.f32.xlu1 %v1630_v19  ;;  %v3178_v20 = vpop.f32.mrf.mxu0 }
 0xe76   :  { %v1629_v21 = vadd.f32 %v1627_v18, %v3848_v53 }
 0xe77   :  { %v1744_v22 = vpop.f32.mrf.mxu0 }
 0xe78   :  { %v1751_v30 = vmul.f32 0.35355338, %v1744_v22  ;;  %v1633_v32 = vsel %vm562_vm11, %v1629_v21, -inf }
 0xe79   :  { %1634 = vmax.xlane.f32.xlu0 %v1633_v32  ;;  %v3189_v33 = vpop.f32.mrf.mxu0 }
 0xe7a   :  { %v1753_v34 = vadd.f32 %v1751_v30, %v3842_v48 }
 0xe7b   :  { %v1747_v35 = vpop.f32.mrf.mxu0 }
 0xe7c   :  { %v1752_v36 = vmul.f32 0.35355338, %v1747_v35  ;;  %v1755_v29 = vsel %vm562_vm11, %v1753_v34, -inf }
 0xe7d   :  { %1756 = vmax.xlane.f32.xlu0 %v1755_v29  ;;  %v3190_v38 = vpop.f32.mrf.mxu0 }
 0xe7e   :  { %v1754_v39 = vadd.f32 %v1752_v36, %v3848_v53 }
 0xe7f   :  { %v1869_v37 = vpop.f32.mrf.mxu0 }
 0xe80   :  { %v1876_v42 = vmul.f32 0.35355338, %v1869_v37  ;;  %v1758_v43 = vsel %vm562_vm11, %v1754_v39, -inf }
 0xe81   :  { %1759 = vmax.xlane.f32.xlu1 %v1758_v43  ;;  %v3201_v44 = vpop.f32.mrf.mxu0 }
 0xe82   :  { %v1878_v46 = vadd.f32 %v1876_v42, %v3842_v48 }
 0xe83   :  { %v1872_v47 = vpop.f32.mrf.mxu0 }
 0xe84   :  { %v1877_v49 = vmul.f32 0.35355338, %v1872_v47  ;;  %v1880_v50 = vsel %vm562_vm11, %v1878_v46, -inf }
 0xe85   :  { %1881 = vmax.xlane.f32.xlu0 %v1880_v50  ;;  %v3202_v51 = vpop.f32.mrf.mxu0 }
 0xe86   :  { %v1879_v52 = vadd.f32 %v1877_v49, %v3848_v53  ;;  %v3545_v53 = vld [vmem:[%s4367_s1 + $0x8] sm:$0xff] }
 0xe87   :  { %v1994_v54 = vpop.f32.mrf.mxu0 }
 0xe88   :  { %v2001_v56 = vmul.f32 0.35355338, %v1994_v54  ;;  %v1883_v28 = vsel %vm562_vm11, %v1879_v52, -inf }
 0xe89   :  { %1884 = vmax.xlane.f32.xlu1 %v1883_v28  ;;  %v3213_v57 = vpop.f32.mrf.mxu0 }
 0xe8a   :  { %v2003_v60 = vadd.f32 %v3544_v58, %v2001_v56 }
 0xe8b   :  { %v1997_v48 = vpop.f32.mrf.mxu0 }
 0xe8c   :  { %v2002_v61 = vmul.f32 0.35355338, %v1997_v48  ;;  %v2005_v62 = vsel %vm562_vm11, %v2003_v60, -inf }
 0xe8d   :  { %2006 = vmax.xlane.f32.xlu0 %v2005_v62  ;;  %v3214_v27 = vpop.f32.mrf.mxu0 }
 0xe8e   :  { %v2004_v0 = vadd.f32 %v3545_v53, %v2002_v61 }
 0xe90   :  { %v2008_v1 = vsel %vm562_vm11, %v2004_v0, -inf }
 0xe91   :  { %2009 = vmax.xlane.f32.xlu1 %v2008_v1 }
 0xefe   :  { %v1632_v2 = vpop.xlane.xlu1 %1631 }
 0xeff   :  { %v1636_v3 = vsub.f32 %v1628_v15, %v1632_v2 }
 0xf01   :  { %v1638_v4 = vmul.f32 1.442695, %v1636_v3 }
 0xf02   :  { %v1635_v5 = vpop.xlane.xlu0 %1634 }
 0xf03   :  { %3498 = vpow2.f32 %v1638_v4  ;;  %v1637_v7 = vsub.f32 %v1629_v21, %v1635_v5 }
 0xf05   :  { %v1640_v8 = vmul.f32 1.442695, %v1637_v7 }
 0xf06   :  { %v1757_v9 = vpop.xlane.xlu0 %1756 }
 0xf07   :  { %3500 = vpow2.f32 %v1640_v8  ;;  %v1761_v10 = vsub.f32 %v1753_v34, %v1757_v9 }
 0xf09   :  { %v1763_v12 = vmul.f32 1.442695, %v1761_v10 }
 0xf0a   :  { %v1760_v20 = vpop.xlane.xlu1 %1759 }
 0xf0b   :  { %3502 = vpow2.f32 %v1763_v12  ;;  %v1762_v21 = vsub.f32 %v1754_v39, %v1760_v20 }
 0xf0d   :  { %v1765_v33 = vmul.f32 1.442695, %v1762_v21 }
 0xf0e   :  { %v1882_v22 = vpop.xlane.xlu0 %1881 }
 0xf0f   :  { %v1886_v32 = vsub.f32 %v1878_v46, %v1882_v22  ;;  %3504 = vpow2.f32 %v1765_v33 }
 0xf10   :  { %v3499_v13 = vpop.eup %3498 }
 0xf11   :  { %v1642_v14 = vsel %vm562_vm11, %v3499_v13, 0.0  ;;  %v1888_v29 = vmul.f32 1.442695, %v1886_v32 }
 0xf12   :  { %1643 = vadd.xlane.f32.xlu0 %v1642_v14  ;;  %v1885_v30 = vpop.xlane.xlu1 %1884 }
 0xf13   :  { %v1887_v34 = vsub.f32 %v1879_v52, %v1885_v30  ;;  %3506 = vpow2.f32 %v1888_v29 }
 0xf14   :  { %v3501_v17 = vpop.eup %3500 }
 0xf15   :  { %v1645_v18 = vsel %vm562_vm11, %v3501_v17, 0.0  ;;  %v1890_v37 = vmul.f32 1.442695, %v1887_v34  ;;  %v3418_v34 = vld [vmem:[%s4371_s5 + $0x78] sm:$0xff]  }
 0xf16   :  { %1646 = vadd.xlane.f32.xlu1 %v1645_v18  ;;  %v2007_v35 = vpop.xlane.xlu0 %2006  ;;  %3222 = vmatpush3.bf16.msra.mxu0 %v3418_v34 }
 0xf17   :  { %v2011_v38 = vsub.f32 %v2003_v60, %v2007_v35  ;;  %3508 = vpow2.f32 %v1890_v37  ;;  %v3419_v35 = vld [vmem:[%s4371_s5 + $0x70] sm:$0xff]   ;;  %3223 = vmatprep.subr.bf16.mxu0 %v3570_v6 }
 0xf18   :  { %v4162_v19 = vpop.eup %3502 }
 0xf19   :  { %v1767_v15 = vsel %vm562_vm11, %v4162_v19, 0.0  ;;  %v2013_v43 = vmul.f32 1.442695, %v2011_v38 }
 0xf1a   :  { %1768 = vadd.xlane.f32.xlu0 %v1767_v15  ;;  %v2010_v36 = vpop.xlane.xlu1 %2009  ;;  %3224 = vmatpush3.bf16.msra.mxu0 %v3419_v35 }
 0xf1b   :  { %v2012_v42 = vsub.f32 %v2004_v0, %v2010_v36  ;;  %3510 = vpow2.f32 %v2013_v43  ;;  %v3420_v36 = vld [vmem:[%s4371_s5 + $0x68] sm:$0xff]   ;;  %3225 = vmatprep.subr.bf16.mxu0 %v3570_v6  ;;  %v3421_v43 = vld [vmem:[%s4371_s5 + $0x60] sm:$0xff]  }
 0xf1c   :  { %v3505_v47 = vpop.eup %3504 }
 0xf1d   :  { %v2015_v44 = vmul.f32 1.442695, %v2012_v42  ;;  %v1770_v49 = vsel %vm562_vm11, %v3505_v47, 0.0 }
 0xf1e   :  { %3226 = vmatpush3.bf16.msra.mxu0 %v3420_v36  ;;  %v3429_v36 = vld [vmem:[%s4372_s6 + $0x60] sm:$0xff]  }
 0xf1f   :  { %3512 = vpow2.f32 %v2015_v44  ;;  %3227 = vmatprep.subr.bf16.mxu0 %v3570_v6  ;;  %v3422_v44 = vld [vmem:[%s4371_s5 + $0x58] sm:$0xff]  }
 0xf20   :  { %v3507_v39 = vpop.eup %3506 }
 0xf21   :  { %v1892_v51 = vsel %vm562_vm11, %v3507_v39, 0.0 }
 0xf22   :  { %3228 = vmatpush3.bf16.msra.mxu0 %v3421_v43  ;;  %v3434_v43 = vld [vmem:[%s4373_s7 + $0x78] sm:$0xff]  }
 0xf23   :  { %3229 = vmatprep.subr.bf16.mxu0 %v3570_v6 }
 0xf24   :  { %v3509_v46 = vpop.eup %3508 }
 0xf25   :  { %v1895_v52 = vsel %vm562_vm11, %v3509_v46, 0.0 }
 0xf26   :  { %3230 = vmatpush3.bf16.msra.mxu0 %v3422_v44 }
 0xf27   :  { %1778 = vrot.lane.b32.xlu1 %v4103_v63, %s3581_s21  ;;  %3231 = vmatprep.subr.bf16.mxu0 %v3570_v6 }
 0xf28   :  { %v3511_v50 = vpop.eup %3510 }
 0xf29   :  { %v2017_v56 = vsel %vm562_vm11, %v3511_v50, 0.0 }
 0xf2c   :  { %v3513_v54 = vpop.eup %3512 }
 0xf2d   :  { %v2020_v28 = vsel %vm562_vm11, %v3513_v54, 0.0 }
 0xf30   :  { %1653 = vrot.lane.b32.xlu0 %v4103_v63, %s3574_s29 }
 0xf4b   :  { %1771 = vadd.xlane.f32.xlu1 %v1770_v49  ;;  %v3423_v49 = vld [vmem:[%s4371_s5 + $0x50] sm:$0xff]  }
 0xf4c   :  { %3232 = vmatpush3.bf16.msra.mxu0 %v3423_v49 }
 0xf4d   :  { %3233 = vmatprep.subr.bf16.mxu0 %v3570_v6 }
 0xf4f   :  { %1893 = vadd.xlane.f32.xlu0 %v1892_v51  ;;  %1896 = vadd.xlane.f32.xlu1 %v1895_v52  ;;  %v3424_v51 = vld [vmem:[%s4371_s5 + $0x48] sm:$0xff]  }
 0xf50   :  { %3234 = vmatpush3.bf16.msra.mxu0 %v3424_v51 }
 0xf51   :  { %3235 = vmatprep.subr.bf16.mxu0 %v3570_v6 }
 0xf53   :  { %2018 = vadd.xlane.f32.xlu0 %v2017_v56  ;;  %2021 = vadd.xlane.f32.xlu1 %v2020_v28  ;;  %v3425_v28 = vld [vmem:[%s4371_s5 + $0x40] sm:$0xff]  }
 0xf54   :  { %3236 = vmatpush3.bf16.msra.mxu0 %v3425_v28 }
 0xf55   :  { %3261 = vmatprep.subr.bf16.mxu0 %v3570_v6 }
 0xf64   :  { %1903 = vrot.lane.b32.xlu1 %v4103_v63, %s3583_s23 }
 0xf69   :  { %2028 = vrot.lane.b32.xlu0 %v4103_v63, %s3582_s22 }
 0xf9b   :  { %v1644_v57 = vpop.xlane.xlu0 %1643 }
 0xf9c   :  { %3514 = vrcp.f32 %v1644_v57 }
 0xf9f   :  { %v1647_v58 = vpop.xlane.xlu1 %1646 }
 0xfa0   :  { %3516 = vrcp.f32 %v1647_v58 }
 0xfa3   :  { %v1769_v60 = vpop.xlane.xlu0 %1768  ;;  %v1779_v1 = vpop.permute.xlu1 %1778 }
 0xfa4   :  { %3518 = vrcp.f32 %v1769_v60 }
 0xfa7   :  { %v1654_v48 = vpop.permute.xlu0 %1653 }
 0xfa8   :  { %3180 = vmatpush3.bf16.msra.mxu1 %v1654_v48 }
 0xfa9   :  { %3191 = vmatprep.subr.bf16.mxu1 %v3570_v6  ;;  %v3515_v61 = vpop.eup %3514 }
 0xfaa   :  { %v1650_v27 = vmul.f32 %v3515_v61, %v3499_v13 }
 0xfad   :  { %v3517_v62 = vpop.eup %3516 }
 0xfae   :  { %v1651_v53 = vmul.f32 %v3517_v62, %v3501_v17 }
 0xfb0   :  { %v1652_v0 = vpack.c.bf16 %v1651_v53, %v1650_v27 }
 0xfb1   :  { %v3519_v7 = vpop.eup %3518 }
 0xfb2   :  { %3182 = vmatmul.mubr.msk.bf16.vlgmr.msra.gmra.mxu1 %vm562_vm11, %v1652_v0  ;;  %v1775_v9 = vmul.f32 %v3519_v7, %v4162_v19 }
 0xfb3   :  { %3192 = vmatpush3.bf16.msra.mxu1 %v1779_v1  ;;  %3193 = vmatprep.mubr.msk.bf16.mxu1 %vm3571_vm0, %v3570_v6 }
 0xfb4   :  { %3203 = vmatprep.subr.bf16.mxu1 %v3570_v6 }
 0xfd4   :  { %v1772_v63 = vpop.xlane.xlu1 %1771 }
 0xfd5   :  { %3520 = vrcp.f32 %v1772_v63 }
 0xfd8   :  { %v1894_v2 = vpop.xlane.xlu0 %1893  ;;  %v1897_v3 = vpop.xlane.xlu1 %1896 }
 0xfd9   :  { %3522 = vrcp.f32 %v1894_v2 }
 0xfda   :  { %3524 = vrcp.f32 %v1897_v3 }
 0xfdc   :  { %v2019_v4 = vpop.xlane.xlu0 %2018  ;;  %v2022_v5 = vpop.xlane.xlu1 %2021 }
 0xfdd   :  { %3526 = vrcp.f32 %v2019_v4 }
 0xfde   :  { %3528 = vrcp.f32 %v2022_v5 }
 0xfe0   :  { %v1904_v17 = vpop.permute.xlu1 %1903  ;;  %v2029_v30 = vpop.permute.xlu0 %2028 }
 0xfe2   :  { %v3521_v8 = vpop.eup %3520 }
 0xfe3   :  { %v1776_v10 = vmul.f32 %v3521_v8, %v3505_v47 }
 0xfe5   :  { %v1777_v12 = vpack.c.bf16 %v1776_v10, %v1775_v9 }
 0xfe6   :  { %v3523_v13 = vpop.eup %3522 }
 0xfe7   :  { %v3525_v14 = vpop.eup %3524  ;;  %3194 = vmatmul.mubr.msk.bf16.vlgmr.msra.gmra.mxu1 %vm562_vm11, %v1777_v12  ;;  %v1900_v18 = vmul.f32 %v3523_v13, %v3507_v39 }
 0xfe8   :  { %3204 = vmatpush3.bf16.msra.mxu1 %v1904_v17  ;;  %3205 = vmatprep.mubr.msk.bf16.mxu1 %vm3571_vm0, %v3570_v6  ;;  %v1901_v15 = vmul.f32 %v3525_v14, %v3509_v46 }
 0xfe9   :  { %3215 = vmatprep.subr.bf16.mxu1 %v3570_v6 }
 0xfea   :  { %v3527_v20 = vpop.eup %3526  ;;  %v1902_v21 = vpack.c.bf16 %v1901_v15, %v1900_v18  ;;  %v2128_v15 = vrot.slane %v4098_v55, %v1061_v25  ;;  %v3426_v25 = vld [vmem:[%s4372_s6 + $0x78] sm:$0xff]  }
 0xfeb   :  { %v3529_v22 = vpop.eup %3528  ;;  %v2025_v19 = vmul.f32 %v3527_v20, %v3511_v50 }
 0xfec   :  { %v2026_v32 = vmul.f32 %v3529_v22, %v3513_v54 }
 0xfee   :  { %v2027_v33 = vpack.c.bf16 %v2026_v32, %v2025_v19 }
 0xfef   :  { %3206 = vmatmul.mubr.msk.bf16.vlgmr.msra.gmra.mxu1 %vm562_vm11, %v1902_v21 }
 0xff0   :  { %3216 = vmatpush3.bf16.msra.mxu1 %v2029_v30  ;;  %3217 = vmatprep.mubr.msk.bf16.mxu1 %vm3571_vm0, %v3570_v6 }
 0xff1   :  { %3241 = vmatprep.subr.bf16.mxu1 %v3570_v6 }
 0xff7   :  { %3218 = vmatmul.mubr.msk.bf16.vlgmr.msra.gmra.mxu1 %vm562_vm11, %v2027_v33 }
 0xff8   :  { %3257 = vmatprep.mubr.msk.bf16.mxu1 %vm3571_vm0, %v3570_v6  ;;  %3242 = vmatpush3.bf16.msra.mxu1 %v3426_v25 }
 0xff9   :  { %3243 = vmatprep.subr.bf16.mxu1 %v3570_v6 }
0x1072   :  { %v1693_v29 = vpop.f32.mrf.mxu1 }
0x1074   :  { %v3183_v38 = vpop.f32.mrf.mxu1 }
0x1075   :  { %v3431_v38 = vld [vmem:[%s4372_s6 + $0x50] sm:$0xff]  }
0x1076   :  { %v1696_v37 = vpop.f32.mrf.mxu1 }
0x1078   :  { %v3184_v42 = vpop.f32.mrf.mxu1 }
0x1079   :  { %v3433_v42 = vld [vmem:[%s4372_s6 + $0x40] sm:$0xff]  }
0x10a7   :  { %v1818_v47 = vpop.f32.mrf.mxu1 }
0x10a9   :  { %v3195_v39 = vpop.f32.mrf.mxu1 }
0x10ab   :  { %v1821_v46 = vpop.f32.mrf.mxu1 }
0x10ac   :  { %v3338_v50 = vpack.i.bf16 %v1821_v46, %v1818_v47 }
0x10ad   :  { %v3196_v52 = vpop.f32.mrf.mxu1 }
0x10ae   :  { %3339 = vrot.lane.b32.xlu1 %v3338_v50, %s3584_s27 }
0x10af   :  { %v1943_v54 = vpop.f32.mrf.mxu1 }
0x10b1   :  { %v3207_v56 = vpop.f32.mrf.mxu1 }
0x10b3   :  { %v1946_v57 = vpop.f32.mrf.mxu1 }
0x10b4   :  { %v3343_v58 = vpack.i.bf16 %v1946_v57, %v1943_v54 }
0x10b5   :  { %v3208_v60 = vpop.f32.mrf.mxu1 }
0x10b6   :  { %3344 = vrot.lane.b32.xlu0 %v3343_v58, %s3585_s3 }
0x10b7   :  { %v2068_v48 = vpop.f32.mrf.mxu1 }
0x10b9   :  { %v3219_v61 = vpop.f32.mrf.mxu1 }
0x10bb   :  { %v2071_v62 = vpop.f32.mrf.mxu1 }
0x10bc   :  { %v3348_v27 = vpack.i.bf16 %v2071_v62, %v2068_v48 }
0x10bd   :  { %v3220_v53 = vpop.f32.mrf.mxu1 }
0x10be   :  { %3349 = vrot.lane.b32.xlu1 %v3348_v27, %s3586_s16  ;;  %v2249_v27 = vrot.slane %v4098_v55, %v1182_v11  ;;  %v3435_v11 = vld [vmem:[%s4373_s7 + $0x70] sm:$0xff]  }
0x1120   :  { %v3340_v0 = vpop.permute.xlu1 %3339 }
0x1121   :  { %v3342_v63 = vunpack.i.h.bf16 %v3340_v0  ;;  %v3341_v2 = vunpack.i.l.bf16 %v3340_v0 }
0x1123   :  { %v2100_v7 = vsel %vm510_vm10, %v1696_v37, %v3342_v63  ;;  %v2099_v8 = vsel %vm510_vm10, %v1693_v29, %v3341_v2  ;;  %v3430_v29 = vld [vmem:[%s4372_s6 + $0x58] sm:$0xff]   ;;  %v3432_v37 = vld [vmem:[%s4372_s6 + $0x48] sm:$0xff]   ;;  %v2255_v2 = vrot.slane %v4098_v55, %v1188_v16  ;;  %v3437_v16 = vld [vmem:[%s4373_s7 + $0x60] sm:$0xff]  }
0x1128   :  { %v3345_v1 = vpop.permute.xlu0 %3344 }
0x1129   :  { %v3347_v3 = vunpack.i.h.bf16 %v3345_v1  ;;  %v3346_v4 = vunpack.i.l.bf16 %v3345_v1 }
0x112b   :  { %v2101_v12 = vsel %vm562_vm11, %v2099_v8, %v3346_v4  ;;  %v2102_v13 = vsel %vm562_vm11, %v2100_v7, %v3347_v3  ;;  %v3436_v8 = vld [vmem:[%s4373_s7 + $0x68] sm:$0xff]  }
0x1130   :  { %v3350_v5 = vpop.permute.xlu1 %3349 }
0x1131   :  { %v3352_v9 = vunpack.i.h.bf16 %v3350_v5  ;;  %v3351_v10 = vunpack.i.l.bf16 %v3350_v5 }
0x1133   :  { %v2103_v14 = vsel %vm1036_vm12, %v2101_v12, %v3351_v10  ;;  %v2104_v17 = vsel %vm1036_vm12, %v2102_v13, %v3352_v9  ;;  %v3438_v9 = vld [vmem:[%s4373_s7 + $0x58] sm:$0xff]   ;;  %v3439_v10 = vld [vmem:[%s4373_s7 + $0x50] sm:$0xff]   ;;  %v3440_v12 = vld [vmem:[%s4373_s7 + $0x48] sm:$0xff]  }
0x1134   :  { %v2802_v18 = vpack.c.bf16 %v2104_v17, %v2103_v14  ;;  %v3441_v13 = vld [vmem:[%s4373_s7 + $0x40] sm:$0xff]   ;;  %v2279_v14 = vrot.slane %v4098_v55, %v1211_v31  ;;  %v2400_v31 = vrot.slane %v4098_v55, %v1331_v59  ;;  %v3443_v59 = vld [vmem:[%s4374_s8 + $0x30] sm:$0xff]  }
0x1136   :  { %3238 = vmatmul.mubr.msk.bf16.vlgmr.msra.gmra.mxu0 %vm3949_vm14, %v2802_v18 }
0x1137   :  { %3277 = vmatprep.mubr.msk.bf16.mxu0 %vm3571_vm0, %v3570_v6  ;;  %3262 = vmatpush3.bf16.msra.mxu0 %v3434_v43 }
0x1138   :  { %3263 = vmatprep.subr.bf16.mxu0 %v3570_v6 }
0x113b   :  { %3264 = vmatpush3.bf16.msra.mxu0 %v3435_v11 }
0x113c   :  { %3265 = vmatprep.subr.bf16.mxu0 %v3570_v6 }
0x113f   :  { %3266 = vmatpush3.bf16.msra.mxu0 %v3436_v8 }
0x1140   :  { %3267 = vmatprep.subr.bf16.mxu0 %v3570_v6 }
0x1143   :  { %3268 = vmatpush3.bf16.msra.mxu0 %v3437_v16  ;;  %v2521_v16 = vrot.slane %v4098_v55, %v1452_v40 }
0x1144   :  { %3269 = vmatprep.subr.bf16.mxu0 %v3570_v6 }
0x1147   :  { %3270 = vmatpush3.bf16.msra.mxu0 %v3438_v9 }
0x1148   :  { %3271 = vmatprep.subr.bf16.mxu0 %v3570_v6 }
0x114b   :  { %3272 = vmatpush3.bf16.msra.mxu0 %v3439_v10 }
0x114c   :  { %3273 = vmatprep.subr.bf16.mxu0 %v3570_v6 }
0x114f   :  { %3274 = vmatpush3.bf16.msra.mxu0 %v3440_v12 }
0x1150   :  { %3275 = vmatprep.subr.bf16.mxu0 %v3570_v6 }
0x1153   :  { %3276 = vmatpush3.bf16.msra.mxu0 %v3441_v13 }
0x11f6   :  { %v2211_v20 = vpop.f32.mrf.mxu0 }
0x11f7   :  { %v2212_v21 = vadd.f32 %v2211_v20, %v2128_v15 }
0x11f8   :  { %v3239_v22 = vpop.f32.mrf.mxu0 }
0x11f9   :  { %v2218_v30 = vadd.f32 %v2212_v21, %v4087_v23  ;;  %v3427_v23 = vld [vmem:[%s4372_s6 + $0x70] sm:$0xff]  }
0x11fa   :  { %v2214_v19 = vpop.f32.mrf.mxu0  ;;  %3244 = vmatpush3.bf16.msra.mxu1 %v3427_v23 }
0x11fb   :  { %v2215_v32 = vadd.f32 %v2214_v19, %v2128_v15  ;;  %2220 = vadd.xlane.f32.xlu0 %v2218_v30  ;;  %v2226_v41 = vmul.f32 %v2218_v30, %v2218_v30  ;;  %3245 = vmatprep.subr.bf16.mxu1 %v3570_v6 }
0x11fc   :  { %v3240_v33 = vpop.f32.mrf.mxu0 }
0x11fd   :  { %v2219_v34 = vadd.f32 %v2215_v32, %v4089_v24  ;;  %v3428_v24 = vld [vmem:[%s4372_s6 + $0x68] sm:$0xff]  }
0x11fe   :  { %3246 = vmatpush3.bf16.msra.mxu1 %v3428_v24 }
0x11ff   :  { %2228 = vadd.xlane.f32.xlu0 %v2226_v41  ;;  %2222 = vadd.xlane.f32.xlu1 %v2219_v34  ;;  %v2227_v35 = vmul.f32 %v2219_v34, %v2219_v34 }
0x1200   :  { %3247 = vmatprep.subr.bf16.mxu1 %v3570_v6 }
0x1202   :  { %3248 = vmatpush3.bf16.msra.mxu1 %v3429_v36 }
0x1203   :  { %2230 = vadd.xlane.f32.xlu0 %v2227_v35  ;;  %3249 = vmatprep.subr.bf16.mxu1 %v3570_v6 }
0x1206   :  { %3250 = vmatpush3.bf16.msra.mxu1 %v3430_v29 }
0x1207   :  { %3251 = vmatprep.subr.bf16.mxu1 %v3570_v6 }
0x120a   :  { %3252 = vmatpush3.bf16.msra.mxu1 %v3431_v38 }
0x120b   :  { %3253 = vmatprep.subr.bf16.mxu1 %v3570_v6 }
0x120e   :  { %3254 = vmatpush3.bf16.msra.mxu1 %v3432_v37 }
0x120f   :  { %3255 = vmatprep.subr.bf16.mxu1 %v3570_v6 }
0x1212   :  { %3256 = vmatpush3.bf16.msra.mxu1 %v3433_v42 }
0x1213   :  { %3281 = vmatprep.subr.bf16.mxu1 %v3570_v6 }
0x1284   :  { %v2221_v44 = vpop.xlane.xlu0 %2220 }
0x1285   :  { %v2224_v47 = vmul.f32 0.03125, %v2221_v44 }
0x1287   :  { %v2234_v46 = vmul.f32 %v2224_v47, %v2224_v47  ;;  %v2238_v48 = vsub.f32 %v2218_v30, %v2224_v47 }
0x1288   :  { %v2229_v39 = vpop.xlane.xlu0 %2228  ;;  %v2223_v49 = vpop.xlane.xlu1 %2222 }
0x1289   :  { %v2232_v50 = vmul.f32 0.03125, %v2229_v39  ;;  %v2225_v51 = vmul.f32 0.03125, %v2223_v49 }
0x128b   :  { %v2236_v52 = vsub.f32 %v2232_v50, %v2234_v46  ;;  %v2235_v28 = vmul.f32 %v2225_v51, %v2225_v51  ;;  %v2239_v53 = vsub.f32 %v2219_v34, %v2225_v51  ;;  %v3442_v50 = vld [vmem:[%s4374_s8 + $0x38] sm:$0xff]   ;;  %v3444_v51 = vld [vmem:[%s4374_s8 + $0x28] sm:$0xff]  }
0x128c   :  { %v2231_v54 = vpop.xlane.xlu0 %2230 }
0x128d   :  { %v2240_v56 = vadd.f32 1e-12, %v2236_v52  ;;  %v2233_v57 = vmul.f32 0.03125, %v2231_v54  ;;  %v3445_v52 = vld [vmem:[%s4374_s8 + $0x20] sm:$0xff]   ;;  %v3446_v54 = vld [vmem:[%s4374_s8 + $0x18] sm:$0xff]  }
0x128f   :  { %3530 = vrsqrt.f32 %v2240_v56  ;;  %v2237_v58 = vsub.f32 %v2233_v57, %v2235_v28  ;;  %v3447_v56 = vld [vmem:[%s4374_s8 + $0x10] sm:$0xff]   ;;  %v3448_v28 = vld [vmem:[%s4374_s8 + $0x8] sm:$0xff]   ;;  %v3449_v57 = vld [vmem:[%s4374_s8] sm:$0xff]  }
0x1291   :  { %v2241_v60 = vadd.f32 1e-12, %v2237_v58 }
0x1293   :  { %3532 = vrsqrt.f32 %v2241_v60 }
0x129c   :  { %v3531_v61 = vpop.eup %3530 }
0x129d   :  { %v2244_v62 = vmul.f32 %v3531_v61, %v2238_v48 }
0x129f   :  { %v2250_v63 = vmul.f32 %v2249_v27, %v2244_v62 }
0x12a0   :  { %v3533_v0 = vpop.eup %3532 }
0x12a1   :  { %v2245_v1 = vmul.f32 %v3533_v0, %v2239_v53  ;;  %v2256_v4 = vadd.f32 %v2255_v2, %v2250_v63 }
0x12a3   :  { %v2251_v3 = vmul.f32 %v2249_v27, %v2245_v1 }
0x12a5   :  { %v2257_v5 = vadd.f32 %v2255_v2, %v2251_v3 }
0x12a7   :  { %v2258_v7 = vpack.c.bf16 %v2257_v5, %v2256_v4 }
0x12a9   :  { %3258 = vmatmul.mubr.bf16.vlgmr.msra.gmra.mxu1 %v2258_v7 }
0x12aa   :  { %3297 = vmatprep.mubr.msk.bf16.mxu1 %vm3571_vm0, %v3570_v6  ;;  %3282 = vmatpush3.bf16.msra.mxu1 %v3442_v50  ;;  %vm2646_vm0 = vcmask 1041408  }
0x12ab   :  { %3283 = vmatprep.subr.bf16.mxu1 %v3570_v6 }
0x12ae   :  { %3284 = vmatpush3.bf16.msra.mxu1 %v3443_v59 }
0x12af   :  { %3285 = vmatprep.subr.bf16.mxu1 %v3570_v6 }
0x12b2   :  { %3286 = vmatpush3.bf16.msra.mxu1 %v3444_v51 }
0x12b3   :  { %3287 = vmatprep.subr.bf16.mxu1 %v3570_v6 }
0x12b6   :  { %3288 = vmatpush3.bf16.msra.mxu1 %v3445_v52 }
0x12b7   :  { %3289 = vmatprep.subr.bf16.mxu1 %v3570_v6 }
0x12ba   :  { %3290 = vmatpush3.bf16.msra.mxu1 %v3446_v54 }
0x12bb   :  { %3291 = vmatprep.subr.bf16.mxu1 %v3570_v6 }
0x12be   :  { %3292 = vmatpush3.bf16.msra.mxu1 %v3447_v56 }
0x12bf   :  { %3293 = vmatprep.subr.bf16.mxu1 %v3570_v6 }
0x12c2   :  { %3294 = vmatpush3.bf16.msra.mxu1 %v3448_v28 }
0x12c3   :  { %3295 = vmatprep.subr.bf16.mxu1 %v3570_v6 }
0x12c6   :  { %3296 = vmatpush3.bf16.msra.mxu1 %v3449_v57 }
0x1369   :  { %v2362_v17 = vpop.f32.mrf.mxu1 }
0x136a   :  { %v2363_v18 = vadd.f32 %v2362_v17, %v2279_v14 }
0x136b   :  { %v3259_v15 = vpop.f32.mrf.mxu1 }
0x136c   :  { %v2371_v20 = vmul.f32 0.70710677, %v2363_v18  ;;  %v2369_v41 = vmul.f32 0.5, %v2363_v18 }
0x136d   :  { %v2365_v21 = vpop.f32.mrf.mxu1 }
0x136e   :  { %3534 = verf.f32 %v2371_v20  ;;  %v2366_v22 = vadd.f32 %v2365_v21, %v2279_v14  ;;  %v2527_v14 = vrot.slane %v4098_v55, %v1458_v45 }
0x136f   :  { %v3260_v30 = vpop.f32.mrf.mxu1 }
0x1370   :  { %v2372_v19 = vmul.f32 0.70710677, %v2366_v22  ;;  %v2370_v35 = vmul.f32 0.5, %v2366_v22  ;;  %v2852_v22 = vld [vmem:[%s4376_s10 + $0x3] ss:$0 sm:$0xff] }
0x1372   :  { %3536 = verf.f32 %v2372_v19 }
0x137b   :  { %v3535_v32 = vpop.eup %3534 }
0x137c   :  { %v2375_v33 = vadd.f32 1.0, %v3535_v32 }
0x137e   :  { %v2377_v23 = vmul.f32 %v2375_v33, %v2369_v41 }
0x137f   :  { %v3537_v34 = vpop.eup %3536 }
0x1380   :  { %v2376_v25 = vadd.f32 1.0, %v3537_v34 }
0x1382   :  { %v2378_v24 = vmul.f32 %v2376_v25, %v2370_v35 }
0x1384   :  { %v2379_v36 = vpack.c.bf16 %v2378_v24, %v2377_v23 }
0x1386   :  { %3278 = vmatmul.mubr.bf16.vlgmr.msra.gmra.mxu0 %v2379_v36 }
0x1446   :  { %v2483_v29 = vpop.f32.mrf.mxu0 }
0x1447   :  { %v2484_v38 = vadd.f32 %v2483_v29, %v2400_v31 }
0x1448   :  { %v3279_v37 = vpop.f32.mrf.mxu0 }
0x1449   :  { %v2490_v42 = vadd.f32 %v2484_v38, %v2256_v4 }
0x144a   :  { %v2486_v43 = vpop.f32.mrf.mxu0 }
0x144b   :  { %v2487_v44 = vadd.f32 %v2486_v43, %v2400_v31  ;;  %2492 = vadd.xlane.f32.xlu0 %v2490_v42  ;;  %v2498_v49 = vmul.f32 %v2490_v42, %v2490_v42 }
0x144c   :  { %v3280_v47 = vpop.f32.mrf.mxu0 }
0x144d   :  { %v2491_v39 = vadd.f32 %v2487_v44, %v2257_v5 }
0x144f   :  { %2500 = vadd.xlane.f32.xlu0 %v2498_v49  ;;  %2494 = vadd.xlane.f32.xlu1 %v2491_v39  ;;  %v2499_v46 = vmul.f32 %v2491_v39, %v2491_v39 }
0x1453   :  { %2502 = vadd.xlane.f32.xlu1 %v2499_v46 }
0x14d4   :  { %v2493_v58 = vpop.xlane.xlu0 %2492 }
0x14d5   :  { %v2496_v60 = vmul.f32 0.03125, %v2493_v58 }
0x14d7   :  { %v2506_v62 = vmul.f32 %v2496_v60, %v2496_v60  ;;  %v2510_v11 = vsub.f32 %v2490_v42, %v2496_v60 }
0x14d8   :  { %v2501_v48 = vpop.xlane.xlu0 %2500  ;;  %v2495_v61 = vpop.xlane.xlu1 %2494 }
0x14d9   :  { %v2504_v27 = vmul.f32 0.03125, %v2501_v48  ;;  %v2497_v53 = vmul.f32 0.03125, %v2495_v61 }
0x14db   :  { %v2508_v0 = vsub.f32 %v2504_v27, %v2506_v62  ;;  %v2507_v2 = vmul.f32 %v2497_v53, %v2497_v53  ;;  %v2511_v6 = vsub.f32 %v2491_v39, %v2497_v53 }
0x14dc   :  { %v2503_v1 = vpop.xlane.xlu1 %2502 }
0x14dd   :  { %v2512_v63 = vadd.f32 1e-12, %v2508_v0  ;;  %v2505_v3 = vmul.f32 0.03125, %v2503_v1 }
0x14df   :  { %3538 = vrsqrt.f32 %v2512_v63  ;;  %v2509_v4 = vsub.f32 %v2505_v3, %v2507_v2 }
0x14e1   :  { %v2513_v5 = vadd.f32 1e-12, %v2509_v4 }
0x14e3   :  { %3540 = vrsqrt.f32 %v2513_v5 }
0x14ec   :  { %v3539_v7 = vpop.eup %3538 }
0x14ed   :  { %v2516_v8 = vmul.f32 %v3539_v7, %v2510_v11 }
0x14ef   :  { %v2522_v12 = vmul.f32 %v2521_v16, %v2516_v8 }
0x14f0   :  { %v3541_v9 = vpop.eup %3540 }
0x14f1   :  { %v2517_v10 = vmul.f32 %v3541_v9, %v2511_v6  ;;  %v2528_v18 = vadd.f32 %v2527_v14, %v2522_v12 }
0x14f3   :  { %v2523_v13 = vmul.f32 %v2521_v16, %v2517_v10 }
0x14f5   :  { %v2529_v17 = vadd.f32 %v2527_v14, %v2523_v13 }
0x14f7   :  { %v2531_v15 = vrot.slane %v2529_v17, 7 }
0x14f9   :  { %v2534_v20 = vsel %vm2533_vm15, %v2528_v18, %v2531_v15 }
0x14fa   :  { %v2535_v21 = vpack.c.bf16 %v2534_v20, %v2534_v20 }
0x14fc   :  { %3298 = vmatmul.mubr.bf16.vlgmr.msra.gmra.mxu1 %v2535_v21 }
0x15bc   :  { %v2639_v40 = vpop.f32.mrf.mxu1 }
0x15bd   :  { %v2640_v30 = vadd.f32 %v2852_v22, %v2639_v40 }
0x15be   :  { %v3299_v19 = vpop.f32.mrf.mxu1 }
0x15bf   :  { %v2645_v32 = vmul.f32 %v2640_v30, %v2640_v30 }
0x15c0   :  { %v2642_v33 = vpop.f32.mrf.mxu1 }
0x15c1   :  { %v2647_v26 = vsel %vm2646_vm0, %v2645_v32, 0.0 }
0x15c2   :  { %2648 = vadd.xlane.f32.xlu1 %v2647_v26  ;;  %v3300_v45 = vpop.f32.mrf.mxu1 }
0x164b   :  { %v2649_v55 = vpop.xlane.xlu1 %2648 }
0x164c   :  { %v2650_v34 = vmax.f32 %v2649_v55, 1e-24 }
0x164e   :  { %3542 = vrsqrt.f32 %v2650_v34 }
0x165b   :  { %v3543_v41 = vpop.eup %3542 }
0x165c   :  { %v2652_v35 = vmul.f32 %v3543_v41, %v2640_v30 }
0x165e   :  { %2653 = vst [vmem:[#allocation2] sm:$0x3] %v2652_v35 }
0x165f   :  { %3557 = shalt.err (!%p3554_p4)
}
0x1660   :  { %2663 = dma.vmem_to_hbm [thread:$0]  %s2661_s24, 32, %s4377_s11, [#allocation3]  }
0x1661   :  { %3566 = dma.done.wait [#allocation3], 32  }
0x1662   :  { %3567 = vsyncadd [#allocation3], 4294967264 }
0x1663   :  { %2667 = vsyncpa [#allocation3], 1 }

</bundles_post_ra>
